<compile_context>
chip_gen: v7x
topology: tpu7x:2x2x1
jax: 0.10.0
libtpu: 0.0.40
codegen_flags: <defaults>
</compile_context>

<pallas_src>
import functools

import jax
import jax.numpy as jnp
from jax.experimental import pallas as pl
from jax.experimental.pallas import tpu as pltpu

EPS = 1e-3


def _bn_kernel(x_ref, gamma_ref, beta_ref, o_ref, *, inv_count):
    # x_ref     : (CT, R)  f32  -- CT channels on sublanes, R = N*H*W on lanes
    # gamma_ref : (CT, 1)  f32
    # beta_ref  : (CT, 1)  f32
    x = x_ref[...]

    # One-pass per-channel statistics (lane-axis reduction -> XLU slot).
    s = jnp.sum(x, axis=-1, keepdims=True)          # (CT, 1)
    ss = jnp.sum(x * x, axis=-1, keepdims=True)     # (CT, 1)
    mean = s * inv_count
    var = ss * inv_count - mean * mean              # biased variance (as PyTorch normalizes)

    # Fold gamma / mean / inv_std into per-channel scale & bias (rsqrt -> EUP).
    scale = gamma_ref[...] * jax.lax.rsqrt(var + EPS)   # (CT, 1)
    bias = beta_ref[...] - mean * scale                  # (CT, 1)

    # Single fused mul-add normalize pass.
    o_ref[...] = x * scale + bias


def _pick_channel_tile(C, target=320):
    """Largest divisor of C that is a multiple of 8 and <= target (vreg-safe)."""
    best = None
    for ct in range(8, min(C, target) + 1, 8):
        if C % ct == 0:
            best = ct
    return best if best is not None else C  # full-dim block is always legal


def batchnorm2d_pallas(x_nchw, gamma, beta):
    """x_nchw: (N, C, H, W) float32; gamma/beta: (C,) float32."""
    N, C, H, W = x_nchw.shape
    R = N * H * W

    if N == 1:
        # Free reshape: channels -> sublanes, spatial -> lanes. No transpose.
        x2d = x_nchw.reshape(C, R)
    else:
        # TODO(synk): for N > 1 this transpose costs one extra HBM pass; a
        # (N, CT, HW) 3-D blocking would avoid it.
        x2d = jnp.transpose(x_nchw, (1, 0, 2, 3)).reshape(C, R)

    g2d = gamma.reshape(C, 1).astype(jnp.float32)
    b2d = beta.reshape(C, 1).astype(jnp.float32)

    CT = _pick_channel_tile(C)
    grid = (C // CT,)

    out2d = pl.pallas_call(
        functools.partial(_bn_kernel, inv_count=1.0 / R),
        out_shape=jax.ShapeDtypeStruct((C, R), jnp.float32),
        grid=grid,
        in_specs=[
            pl.BlockSpec((CT, R), lambda c: (c, 0)),
            pl.BlockSpec((CT, 1), lambda c: (c, 0)),
            pl.BlockSpec((CT, 1), lambda c: (c, 0)),
        ],
        out_specs=pl.BlockSpec((CT, R), lambda c: (c, 0)),
        compiler_params=pltpu.CompilerParams(
            # per-channel-tile stats are independent -> shard across TCs (v7x)
            dimension_semantics=("parallel",),
        ),
    )(x2d, g2d, b2d)

    if N == 1:
        return out2d.reshape(1, C, H, W)
    return jnp.transpose(out2d.reshape(C, N, H, W), (1, 0, 2, 3))


if __name__ == "__main__":
    # Shapes from the module: BatchNorm2d(1824) applied to (1, 1824, 7, 7).
    N, C, H, W = 1, 1824, 7, 7
    key = jax.random.PRNGKey(0)
    kx, kg, kb = jax.random.split(key, 3)
    x = jax.random.normal(kx, (N, C, H, W), dtype=jnp.float32)
    gamma = 1.0 + 0.1 * jax.random.normal(kg, (C,), dtype=jnp.float32)
    beta = 0.1 * jax.random.normal(kb, (C,), dtype=jnp.float32)

    out = batchnorm2d_pallas(x, gamma, beta)
    out = jax.block_until_ready(out)

    # Pure-JAX reference (training-mode batch stats, biased variance, eps=1e-3).
    mean = jnp.mean(x, axis=(0, 2, 3), keepdims=True)
    var = jnp.mean((x - mean) ** 2, axis=(0, 2, 3), keepdims=True)
    ref = (x - mean) / jnp.sqrt(var + EPS) * gamma.reshape(1, C, 1, 1) + beta.reshape(1, C, 1, 1)
    assert jnp.max(jnp.abs(out - ref)) < 1e-4, "mismatch vs reference"

    # TODO(synk): module also tracks running_mean/running_var (momentum=0.01);
    # the forward output x512 does not depend on them, so they are not emitted.

    print("KERNEL_OK")
</pallas_src>

<mosaic_0001>
module attributes {stable_mosaic.version = 11 : i64} {
  func.func @_bn_kernel(%arg0: i32, %arg1: memref<304x49xf32, #tpu.memory_space<vmem>>, %arg2: memref<304x1xf32, #tpu.memory_space<vmem>>, %arg3: memref<304x1xf32, #tpu.memory_space<vmem>>, %arg4: memref<304x49xf32, #tpu.memory_space<vmem>>) attributes {dimension_semantics = [#tpu.dimension_semantics<parallel>], iteration_bounds = array<i64: 6>, scalar_prefetch = 0 : i64, scratch_operands = 0 : i64, tpu.core_type = #tpu.core_type<tc>, window_params = [{transform_indices = @transform_0, window_bounds = array<i64: 304, 49>}, {transform_indices = @transform_1, window_bounds = array<i64: 304, 1>}, {transform_indices = @transform_2, window_bounds = array<i64: 304, 1>}, {transform_indices = @transform_3, window_bounds = array<i64: 304, 49>}]} {
    %c0 = arith.constant 0 : index
    %c0_0 = arith.constant 0 : index
    %0 = vector.load %arg1[%c0, %c0_0] : memref<304x49xf32, #tpu.memory_space<vmem>>, vector<304x49xf32>
    %cst = arith.constant dense<0.000000e+00> : vector<304xf32>
    %1 = vector.multi_reduction <add>, %0, %cst [1] : vector<304x49xf32> to vector<304xf32>
    %2 = vector.shape_cast %1 : vector<304xf32> to vector<304x1xf32>
    %3 = arith.mulf %0, %0 : vector<304x49xf32>
    %cst_1 = arith.constant dense<0.000000e+00> : vector<304xf32>
    %4 = vector.multi_reduction <add>, %3, %cst_1 [1] : vector<304x49xf32> to vector<304xf32>
    %5 = vector.shape_cast %4 : vector<304xf32> to vector<304x1xf32>
    %cst_2 = arith.constant 0.0204081628 : f32
    %6 = vector.broadcast %cst_2 : f32 to vector<304x1xf32>
    %7 = arith.mulf %2, %6 : vector<304x1xf32>
    %cst_3 = arith.constant 0.0204081628 : f32
    %8 = vector.broadcast %cst_3 : f32 to vector<304x1xf32>
    %9 = arith.mulf %5, %8 : vector<304x1xf32>
    %10 = arith.mulf %7, %7 : vector<304x1xf32>
    %11 = arith.subf %9, %10 : vector<304x1xf32>
    %c0_4 = arith.constant 0 : index
    %c0_5 = arith.constant 0 : index
    %12 = vector.load %arg2[%c0_4, %c0_5] : memref<304x1xf32, #tpu.memory_space<vmem>>, vector<304x1xf32>
    %cst_6 = arith.constant 1.000000e-03 : f32
    %13 = vector.broadcast %cst_6 : f32 to vector<304x1xf32>
    %14 = arith.addf %11, %13 : vector<304x1xf32>
    %15 = math.rsqrt %14 : vector<304x1xf32>
    %16 = arith.mulf %12, %15 : vector<304x1xf32>
    %c0_7 = arith.constant 0 : index
    %c0_8 = arith.constant 0 : index
    %17 = vector.load %arg3[%c0_7, %c0_8] : memref<304x1xf32, #tpu.memory_space<vmem>>, vector<304x1xf32>
    %18 = arith.mulf %7, %16 : vector<304x1xf32>
    %19 = arith.subf %17, %18 : vector<304x1xf32>
    %20 = vector.broadcast %16 : vector<304x1xf32> to vector<304x49xf32>
    %21 = arith.mulf %0, %20 : vector<304x49xf32>
    %22 = vector.broadcast %19 : vector<304x1xf32> to vector<304x49xf32>
    %23 = arith.addf %21, %22 : vector<304x49xf32>
    %c0_9 = arith.constant 0 : index
    %c0_10 = arith.constant 0 : index
    %24 = vector.load %arg4[%c0_9, %c0_10] : memref<304x49xf32, #tpu.memory_space<vmem>>, vector<304x49xf32>
    tpu.vector_store %arg4[%c0_9, %c0_10], %23 {strides = array<i32>} : memref<304x49xf32, #tpu.memory_space<vmem>>, vector<304x49xf32>,
    return
  }
  func.func @transform_0(%arg0: i32) -> (i32, i32) {
    %c0_i32 = arith.constant 0 : i32
    %c0_i32_0 = arith.constant 0 : i32
    return %arg0, %c0_i32 : i32, i32
  }
  func.func @transform_1(%arg0: i32) -> (i32, i32) {
    %c0_i32 = arith.constant 0 : i32
    %c0_i32_0 = arith.constant 0 : i32
    return %arg0, %c0_i32 : i32, i32
  }
  func.func @transform_2(%arg0: i32) -> (i32, i32) {
    %c0_i32 = arith.constant 0 : i32
    %c0_i32_0 = arith.constant 0 : i32
    return %arg0, %c0_i32 : i32, i32
  }
  func.func @transform_3(%arg0: i32) -> (i32, i32) {
    %c0_i32 = arith.constant 0 : i32
    %c0_i32_0 = arith.constant 0 : i32
    return %arg0, %c0_i32 : i32, i32
  }
}

</mosaic_0001>

<bundles_post_ra>
// kernel: tpu_custom_call.1
= control target key start
LH: loop header
LB: loop body
LE: loop exit
PB: predicated region body
PF: predicated region fallthrough
CT: control target
= control target key end

     0   :  { %s1680_s12 = smov 0   ;;  %s2757_s0 = inlined_call_operand.vmem [shape: f32[1824,49], index: 0, kind: input, shape index: {}]   ;;  %s2758_s1 = inlined_call_operand.vmem [shape: f32[1824,1], index: 1, kind: input, shape index: {}]   ;;  %s2759_s2 = inlined_call_operand.vmem [shape: f32[1824,1], index: 2, kind: input, shape index: {}]   ;;  %s2760_s3 = inlined_call_operand.vmem [shape: f32[1824,49], index: 3, kind: output, shape index: {}]  }
   0x1 LB: > { %s1515_s13 = sadd.s32 4294967295, %s1657_s12   ;;  %p1519_p0 = scmp.ge.s32.totalorder %s1657_s12, 1  ;;  %s1657_s12 = sphi %s1680_s12, %s13_s12  }
   0x2   : > { %p160_p1 = scmp.lt.s32.totalorder %s1657_s12, 7 }
   0x4   : > { %p161_p2 = pnand %p1519_p0, %p160_p1 }
   0x6   : > { %164 = sbr.rel (%p161_p2) target bundleno = 551 (0x227), region = 32 }
   0xd   : > { %s194_s14 = smul.u32 38, %s1515_s13  ;;  %vm256_vm0 = vcmask 400384  }
   0xf   : > { %p195_p3 = scmp.lt.s32.totalorder %s194_s14, 227 }
  0x11   : > { %s2828_s14 = smov (!%p195_p3, %s194_s14), 227 }
  0x12   : > { %s1688_s15 = sshll.u32 %s2828_s14, 3 }
  0x13   : > { %s1694_s18 = scalar_lea.vmem %s2757_s0, %s1688_s15  ;;  %s2095_s21 = scalar_lea.vmem %s2758_s1, %s1688_s15 }
  0x14   : > { %v1697_v0 = vld [vmem:[%s1694_s18 + $0x10] sm:$0xff]  ;;  %v1700_v1 = vld [vmem:[%s1694_s18] sm:$0xff]  ;;  %v1703_v2 = vld [vmem:[%s1694_s18 + $0x18] sm:$0xff]  ;;  %s2391_s24 = scalar_lea.vmem %s2759_s2, %s1688_s15  ;;  %s2598_s27 = scalar_lea.vmem %s2760_s3, %s1688_s15 }
  0x15   : > { %v263_v3 = vsel %vm256_vm0, %v1697_v0, 0.0  ;;  %v257_v4 = vsel %vm256_vm0, %v1700_v1, 0.0  ;;  %v1710_v5 = vld [vmem:[%s1694_s18 + $0x8] sm:$0xff]  ;;  %v266_v6 = vsel %vm256_vm0, %v1703_v2, 0.0  ;;  %v1720_v9 = vld [vmem:[%s1694_s18 + $0x20] sm:$0xff]  ;;  %v1727_v12 = vld [vmem:[%s1694_s18 + $0x38] sm:$0xff] }
  0x16   : > { %264 = vadd.xlane.f32.xlu1 %v263_v3  ;;  %258 = vadd.xlane.f32.xlu0 %v257_v4  ;;  %v260_v7 = vsel %vm256_vm0, %v1710_v5, 0.0  ;;  %v1717_v8 = vld [vmem:[%s1694_s18 + $0x28] sm:$0xff]  ;;  %v269_v11 = vsel %vm256_vm0, %v1720_v9, 0.0  ;;  %v1730_v13 = vld [vmem:[%s1694_s18 + $0x30] sm:$0xff]  ;;  %v278_v14 = vsel %vm256_vm0, %v1727_v12, 0.0  ;;  %v1740_v17 = vld [vmem:[%s1694_s18 + $0x40] sm:$0xff] }
  0x17   : > { %v272_v10 = vsel %vm256_vm0, %v1717_v8, 0.0  ;;  %v275_v15 = vsel %vm256_vm0, %v1730_v13, 0.0  ;;  %v1737_v16 = vld [vmem:[%s1694_s18 + $0x48] sm:$0xff]  ;;  %v281_v19 = vsel %vm256_vm0, %v1740_v17, 0.0  ;;  %v1747_v20 = vld [vmem:[%s1694_s18 + $0x58] sm:$0xff]  ;;  %v1750_v21 = vld [vmem:[%s1694_s18 + $0x50] sm:$0xff] }
  0x18   : > { %v284_v18 = vsel %vm256_vm0, %v1737_v16, 0.0  ;;  %v290_v22 = vsel %vm256_vm0, %v1747_v20, 0.0  ;;  %v287_v23 = vsel %vm256_vm0, %v1750_v21, 0.0  ;;  %v1757_v24 = vld [vmem:[%s1694_s18 + $0x68] sm:$0xff]  ;;  %v1760_v25 = vld [vmem:[%s1694_s18 + $0x60] sm:$0xff]  ;;  %v1767_v28 = vld [vmem:[%s1694_s18 + $0x78] sm:$0xff] }
  0x19   : > { %v296_v26 = vsel %vm256_vm0, %v1757_v24, 0.0  ;;  %v293_v27 = vsel %vm256_vm0, %v1760_v25, 0.0  ;;  %v1770_v29 = vld [vmem:[%s1694_s18 + $0x70] sm:$0xff]  ;;  %v302_v30 = vsel %vm256_vm0, %v1767_v28, 0.0  ;;  %v1777_v32 = vld [vmem:[%s1694_s18 + $0x88] sm:$0xff]  ;;  %v1780_v33 = vld [vmem:[%s1694_s18 + $0x80] sm:$0xff] }
  0x1a   : > { %267 = vadd.xlane.f32.xlu1 %v266_v6  ;;  %261 = vadd.xlane.f32.xlu0 %v260_v7  ;;  %v299_v31 = vsel %vm256_vm0, %v1770_v29, 0.0  ;;  %v308_v34 = vsel %vm256_vm0, %v1777_v32, 0.0  ;;  %v305_v35 = vsel %vm256_vm0, %v1780_v33, 0.0  ;;  %v1787_v36 = vld [vmem:[%s1694_s18 + $0x98] sm:$0xff]  ;;  %v1790_v37 = vld [vmem:[%s1694_s18 + $0x90] sm:$0xff]  ;;  %v1797_v40 = vld [vmem:[%s1694_s18 + $0xa8] sm:$0xff] }
  0x1b   : > { %v314_v38 = vsel %vm256_vm0, %v1787_v36, 0.0  ;;  %v311_v39 = vsel %vm256_vm0, %v1790_v37, 0.0  ;;  %v1800_v41 = vld [vmem:[%s1694_s18 + $0xa0] sm:$0xff]  ;;  %v320_v42 = vsel %vm256_vm0, %v1797_v40, 0.0  ;;  %v1807_v44 = vld [vmem:[%s1694_s18 + $0xb8] sm:$0xff]  ;;  %v1810_v45 = vld [vmem:[%s1694_s18 + $0xb0] sm:$0xff] }
  0x1c   : > { %v317_v43 = vsel %vm256_vm0, %v1800_v41, 0.0  ;;  %v326_v46 = vsel %vm256_vm0, %v1807_v44, 0.0  ;;  %v323_v47 = vsel %vm256_vm0, %v1810_v45, 0.0  ;;  %v1817_v48 = vld [vmem:[%s1694_s18 + $0xc8] sm:$0xff]  ;;  %v1820_v49 = vld [vmem:[%s1694_s18 + $0xc0] sm:$0xff]  ;;  %v1827_v52 = vld [vmem:[%s1694_s18 + $0xd8] sm:$0xff] }
  0x1d   : > { %v332_v50 = vsel %vm256_vm0, %v1817_v48, 0.0  ;;  %v329_v51 = vsel %vm256_vm0, %v1820_v49, 0.0  ;;  %v1830_v53 = vld [vmem:[%s1694_s18 + $0xd0] sm:$0xff]  ;;  %v338_v54 = vsel %vm256_vm0, %v1827_v52, 0.0  ;;  %v1837_v56 = vld [vmem:[%s1694_s18 + $0xe8] sm:$0xff]  ;;  %v1840_v57 = vld [vmem:[%s1694_s18 + $0xe0] sm:$0xff] }
  0x1e   : > { %273 = vadd.xlane.f32.xlu1 %v272_v10  ;;  %270 = vadd.xlane.f32.xlu0 %v269_v11  ;;  %v335_v55 = vsel %vm256_vm0, %v1830_v53, 0.0  ;;  %v344_v58 = vsel %vm256_vm0, %v1837_v56, 0.0  ;;  %v341_v59 = vsel %vm256_vm0, %v1840_v57, 0.0  ;;  %v1847_v60 = vld [vmem:[%s1694_s18 + $0xf8] sm:$0xff]  ;;  %v1850_v61 = vld [vmem:[%s1694_s18 + $0xf0] sm:$0xff]  ;;  %v1857_v3 = vld [vmem:[%s1694_s18 + $0x108] sm:$0xff] }
  0x1f   : > { %v350_v62 = vsel %vm256_vm0, %v1847_v60, 0.0  ;;  %v347_v63 = vsel %vm256_vm0, %v1850_v61, 0.0  ;;  %v1860_v4 = vld [vmem:[%s1694_s18 + $0x100] sm:$0xff]  ;;  %v356_v6 = vsel %vm256_vm0, %v1857_v3, 0.0  ;;  %v1867_v10 = vld [vmem:[%s1694_s18 + $0x118] sm:$0xff]  ;;  %v1870_v11 = vld [vmem:[%s1694_s18 + $0x110] sm:$0xff] }
  0x20   : > { %v353_v7 = vsel %vm256_vm0, %v1860_v4, 0.0 }
  0x22   : > { %279 = vadd.xlane.f32.xlu1 %v278_v14  ;;  %276 = vadd.xlane.f32.xlu0 %v275_v15  ;;  %v362_v14 = vsel %vm256_vm0, %v1867_v10, 0.0  ;;  %v359_v15 = vsel %vm256_vm0, %v1870_v11, 0.0 }
  0x26   : > { %285 = vadd.xlane.f32.xlu1 %v284_v18  ;;  %282 = vadd.xlane.f32.xlu0 %v281_v19  ;;  %v1877_v18 = vld [vmem:[%s1694_s18 + $0x128] sm:$0xff]  ;;  %v1880_v19 = vld [vmem:[%s1694_s18 + $0x120] sm:$0xff] }
  0x2a   : > { %291 = vadd.xlane.f32.xlu1 %v290_v22  ;;  %288 = vadd.xlane.f32.xlu0 %v287_v23  ;;  %v368_v22 = vsel %vm256_vm0, %v1877_v18, 0.0  ;;  %v365_v23 = vsel %vm256_vm0, %v1880_v19, 0.0 }
  0x2e   : > { %297 = vadd.xlane.f32.xlu1 %v296_v26  ;;  %294 = vadd.xlane.f32.xlu0 %v293_v27  ;;  %v372_v26 = vmul.f32 %v1710_v5, %v1710_v5  ;;  %v371_v27 = vmul.f32 %v1700_v1, %v1700_v1  ;;  %v376_v1 = vmul.f32 %v1717_v8, %v1717_v8 }
  0x32   : > { %303 = vadd.xlane.f32.xlu1 %v302_v30  ;;  %300 = vadd.xlane.f32.xlu0 %v299_v31  ;;  %v412_v30 = vsel %vm256_vm0, %v372_v26, 0.0  ;;  %v409_v31 = vsel %vm256_vm0, %v371_v27, 0.0  ;;  %v393_v26 = vmul.f32 %v1810_v45, %v1810_v45  ;;  %v396_v27 = vmul.f32 %v1817_v48, %v1817_v48 }
  0x33   : > { %v398_v45 = vmul.f32 %v1827_v52, %v1827_v52 }
  0x36   : > { %309 = vadd.xlane.f32.xlu1 %v308_v34  ;;  %306 = vadd.xlane.f32.xlu0 %v305_v35  ;;  %v374_v34 = vmul.f32 %v1703_v2, %v1703_v2  ;;  %v373_v35 = vmul.f32 %v1697_v0, %v1697_v0  ;;  %v378_v0 = vmul.f32 %v1727_v12, %v1727_v12 }
  0x38   : > { %v415_v5 = vsel %vm256_vm0, %v373_v35, 0.0  ;;  %v490_v35 = vsel %vm256_vm0, %v398_v45, 0.0 }
  0x3a   : > { %315 = vadd.xlane.f32.xlu1 %v314_v38  ;;  %312 = vadd.xlane.f32.xlu0 %v311_v39  ;;  %v418_v38 = vsel %vm256_vm0, %v374_v34, 0.0  ;;  %v375_v39 = vmul.f32 %v1720_v9, %v1720_v9  ;;  %v380_v9 = vmul.f32 %v1737_v16, %v1737_v16  ;;  %v397_v34 = vmul.f32 %v1830_v53, %v1830_v53 }
  0x3b   : > { %v402_v53 = vmul.f32 %v1847_v60, %v1847_v60 }
  0x3c   : > { %v421_v2 = vsel %vm256_vm0, %v375_v39, 0.0  ;;  %v487_v48 = vsel %vm256_vm0, %v397_v34, 0.0 }
  0x3d   : > { %v502_v39 = vsel %vm256_vm0, %v402_v53, 0.0 }
  0x3e   : > { %321 = vadd.xlane.f32.xlu1 %v320_v42  ;;  %318 = vadd.xlane.f32.xlu0 %v317_v43  ;;  %v424_v42 = vsel %vm256_vm0, %v376_v1, 0.0  ;;  %v377_v43 = vmul.f32 %v1730_v13, %v1730_v13  ;;  %v382_v13 = vmul.f32 %v1747_v20, %v1747_v20  ;;  %v401_v1 = vmul.f32 %v1850_v61, %v1850_v61 }
  0x3f   : > { %v406_v61 = vmul.f32 %v1867_v10, %v1867_v10 }
  0x40   : > { %v427_v8 = vsel %vm256_vm0, %v377_v43, 0.0 }
  0x42   : > { %327 = vadd.xlane.f32.xlu1 %v326_v46  ;;  %324 = vadd.xlane.f32.xlu0 %v323_v47  ;;  %v430_v46 = vsel %vm256_vm0, %v378_v0, 0.0  ;;  %v379_v47 = vmul.f32 %v1740_v17, %v1740_v17  ;;  %v384_v17 = vmul.f32 %v1757_v24, %v1757_v24  ;;  %v405_v0 = vmul.f32 %v1870_v11, %v1870_v11 }
  0x44   : > { %v433_v12 = vsel %vm256_vm0, %v379_v47, 0.0 }
  0x46   : > { %333 = vadd.xlane.f32.xlu1 %v332_v50  ;;  %330 = vadd.xlane.f32.xlu0 %v329_v51  ;;  %v436_v50 = vsel %vm256_vm0, %v380_v9, 0.0  ;;  %v381_v51 = vmul.f32 %v1750_v21, %v1750_v21  ;;  %v386_v21 = vmul.f32 %v1767_v28, %v1767_v28  ;;  %v407_v9 = vmul.f32 %v1880_v19, %v1880_v19 }
  0x48   : > { %v439_v16 = vsel %vm256_vm0, %v381_v51, 0.0 }
  0x4a   : > { %339 = vadd.xlane.f32.xlu1 %v338_v54  ;;  %336 = vadd.xlane.f32.xlu0 %v335_v55  ;;  %v442_v54 = vsel %vm256_vm0, %v382_v13, 0.0  ;;  %v383_v55 = vmul.f32 %v1760_v25, %v1760_v25  ;;  %v388_v25 = vmul.f32 %v1777_v32, %v1777_v32 }
  0x4c   : > { %v445_v20 = vsel %vm256_vm0, %v383_v55, 0.0 }
  0x4e   : > { %345 = vadd.xlane.f32.xlu1 %v344_v58  ;;  %342 = vadd.xlane.f32.xlu0 %v341_v59  ;;  %v448_v58 = vsel %vm256_vm0, %v384_v17, 0.0  ;;  %v385_v59 = vmul.f32 %v1770_v29, %v1770_v29  ;;  %v390_v29 = vmul.f32 %v1787_v36, %v1787_v36 }
  0x50   : > { %v451_v24 = vsel %vm256_vm0, %v385_v59, 0.0 }
  0x52   : > { %351 = vadd.xlane.f32.xlu1 %v350_v62  ;;  %348 = vadd.xlane.f32.xlu0 %v347_v63  ;;  %v454_v62 = vsel %vm256_vm0, %v386_v21, 0.0  ;;  %v387_v63 = vmul.f32 %v1780_v33, %v1780_v33  ;;  %v392_v33 = vmul.f32 %v1797_v40, %v1797_v40 }
  0x54   : > { %v457_v28 = vsel %vm256_vm0, %v387_v63, 0.0  ;;  %v472_v36 = vsel %vm256_vm0, %v392_v33, 0.0 }
  0x56   : > { %357 = vadd.xlane.f32.xlu1 %v356_v6  ;;  %354 = vadd.xlane.f32.xlu0 %v353_v7  ;;  %v460_v6 = vsel %vm256_vm0, %v388_v25, 0.0  ;;  %v389_v7 = vmul.f32 %v1790_v37, %v1790_v37 }
  0x58   : > { %v463_v32 = vsel %vm256_vm0, %v389_v7, 0.0 }
  0x5a   : > { %363 = vadd.xlane.f32.xlu1 %v362_v14  ;;  %360 = vadd.xlane.f32.xlu0 %v359_v15  ;;  %v466_v14 = vsel %vm256_vm0, %v390_v29, 0.0  ;;  %v391_v15 = vmul.f32 %v1800_v41, %v1800_v41  ;;  %v475_v41 = vsel %vm256_vm0, %v393_v26, 0.0 }
  0x5c   : > { %v469_v37 = vsel %vm256_vm0, %v391_v15, 0.0 }
  0x5e   : > { %369 = vadd.xlane.f32.xlu1 %v368_v22  ;;  %366 = vadd.xlane.f32.xlu0 %v365_v23  ;;  %v1659_v22 = vmov 0   ;;  %v394_v23 = vmul.f32 %v1807_v44, %v1807_v44 }
  0x5f   : > { %1536 = vset.pattern.permute.xlu1 %v1659_v22  ;;  %1535 = vset.pattern.permute.xlu0 %v1659_v22 }
  0x60   : > { %v478_v40 = vsel %vm256_vm0, %v394_v23, 0.0 }
  0x62   : > { %413 = vadd.xlane.f32.xlu1 %v412_v30  ;;  %410 = vadd.xlane.f32.xlu0 %v409_v31  ;;  %v395_v30 = vmul.f32 %v1820_v49, %v1820_v49  ;;  %v484_v31 = vsel %vm256_vm0, %v396_v27, 0.0  ;;  %v400_v49 = vmul.f32 %v1837_v56, %v1837_v56  ;;  %v499_v56 = vsel %vm256_vm0, %v401_v1, 0.0 }
  0x64   : > { %v481_v44 = vsel %vm256_vm0, %v395_v30, 0.0 }
  0x66   : > { %419 = vadd.xlane.f32.xlu1 %v418_v38  ;;  %416 = vadd.xlane.f32.xlu0 %v415_v5  ;;  %v399_v38 = vmul.f32 %v1840_v57, %v1840_v57  ;;  %v496_v5 = vsel %vm256_vm0, %v400_v49, 0.0  ;;  %v404_v57 = vmul.f32 %v1857_v3, %v1857_v3  ;;  %v514_v3 = vsel %vm256_vm0, %v406_v61, 0.0 }
  0x68   : > { %v493_v52 = vsel %vm256_vm0, %v399_v38, 0.0 }
  0x6a   : > { %425 = vadd.xlane.f32.xlu1 %v424_v42  ;;  %422 = vadd.xlane.f32.xlu0 %v421_v2  ;;  %v403_v42 = vmul.f32 %v1860_v4, %v1860_v4  ;;  %v508_v2 = vsel %vm256_vm0, %v404_v57, 0.0  ;;  %v511_v4 = vsel %vm256_vm0, %v405_v0, 0.0 }
  0x6c   : > { %v505_v60 = vsel %vm256_vm0, %v403_v42, 0.0 }
  0x6e   : > { %431 = vadd.xlane.f32.xlu1 %v430_v46  ;;  %428 = vadd.xlane.f32.xlu0 %v427_v8  ;;  %v408_v8 = vmul.f32 %v1877_v18, %v1877_v18 }
  0x70   : > { %v520_v11 = vsel %vm256_vm0, %v408_v8, 0.0 }
  0x72   : > { %437 = vadd.xlane.f32.xlu1 %v436_v50  ;;  %434 = vadd.xlane.f32.xlu0 %v433_v12  ;;  %v517_v50 = vsel %vm256_vm0, %v407_v9, 0.0 }
  0x76   : > { %443 = vadd.xlane.f32.xlu1 %v442_v54  ;;  %440 = vadd.xlane.f32.xlu0 %v439_v16 }
  0x7a   : > { %449 = vadd.xlane.f32.xlu1 %v448_v58  ;;  %446 = vadd.xlane.f32.xlu0 %v445_v20 }
  0x7e   : > { %455 = vadd.xlane.f32.xlu1 %v454_v62  ;;  %452 = vadd.xlane.f32.xlu0 %v451_v24 }
  0x82   : > { %461 = vadd.xlane.f32.xlu1 %v460_v6  ;;  %458 = vadd.xlane.f32.xlu0 %v457_v28 }
  0x86   : > { %467 = vadd.xlane.f32.xlu1 %v466_v14  ;;  %464 = vadd.xlane.f32.xlu0 %v463_v32 }
  0x8a   : > { %473 = vadd.xlane.f32.xlu1 %v472_v36  ;;  %470 = vadd.xlane.f32.xlu0 %v469_v37 }
  0x8e   : > { %479 = vadd.xlane.f32.xlu1 %v478_v40  ;;  %476 = vadd.xlane.f32.xlu0 %v475_v41 }
  0x92   : > { %485 = vadd.xlane.f32.xlu1 %v484_v31  ;;  %482 = vadd.xlane.f32.xlu0 %v481_v44 }
  0x96   : > { %491 = vadd.xlane.f32.xlu1 %v490_v35  ;;  %488 = vadd.xlane.f32.xlu0 %v487_v48 }
  0x9a   : > { %497 = vadd.xlane.f32.xlu1 %v496_v5  ;;  %494 = vadd.xlane.f32.xlu0 %v493_v52 }
  0x9e   : > { %503 = vadd.xlane.f32.xlu1 %v502_v39  ;;  %500 = vadd.xlane.f32.xlu0 %v499_v56 }
  0xa2   : > { %509 = vadd.xlane.f32.xlu1 %v508_v2  ;;  %506 = vadd.xlane.f32.xlu0 %v505_v60 }
  0xa3   : > { %v265_v43 = vpop.xlane.xlu1 %264  ;;  %v259_v46 = vpop.xlane.xlu0 %258 }
  0xa4   : > { %v2060_v27 = vmul.f32 0.020408163, %v259_v46  ;;  %v2074_v52 = vmul.f32 0.020408163, %v265_v43 }
  0xa6   : > { %515 = vadd.xlane.f32.xlu1 %v514_v3  ;;  %512 = vadd.xlane.f32.xlu0 %v511_v4  ;;  %v599_v45 = vmul.f32 %v2060_v27, %v2060_v27  ;;  %v601_v0 = vmul.f32 %v2074_v52, %v2074_v52 }
  0xa7   : > { %v268_v10 = vpop.xlane.xlu1 %267  ;;  %v262_v47 = vpop.xlane.xlu0 %261 }
  0xa8   : > { %v2066_v44 = vmul.f32 0.020408163, %v262_v47  ;;  %v2070_v48 = vmul.f32 0.020408163, %v268_v10 }
  0xaa   : > { %521 = vadd.xlane.f32.xlu1 %v520_v11  ;;  %518 = vadd.xlane.f32.xlu0 %v517_v50  ;;  %v600_v49 = vmul.f32 %v2066_v44, %v2066_v44  ;;  %v602_v42 = vmul.f32 %v2070_v48, %v2070_v48 }
  0xab   : > { %v274_v12 = vpop.xlane.xlu1 %273  ;;  %v271_v13 = vpop.xlane.xlu0 %270 }
  0xac   : > { %v2076_v39 = vmul.f32 0.020408163, %v271_v13  ;;  %v2082_v3 = vmul.f32 0.020408163, %v274_v12 }
  0xae   : > { %v603_v10 = vmul.f32 %v2076_v39, %v2076_v39 }
  0xaf   : > { %v2000_v51 = vpop.xlane.xlu1 %279  ;;  %v2002_v54 = vpop.xlane.xlu0 %276 }
  0xb0   : > { %v2089_v12 = vmul.f32 0.020408163, %v2002_v54  ;;  %v2102_v54 = vmul.f32 0.020408163, %v2000_v51 }
  0xb3   : > { %v2004_v18 = vpop.xlane.xlu1 %285  ;;  %v2006_v16 = vpop.xlane.xlu0 %282 }
  0xb7   : > { %v2008_v19 = vpop.xlane.xlu1 %291  ;;  %v2010_v17 = vpop.xlane.xlu0 %288 }
  0xbb   : > { %v2012_v55 = vpop.xlane.xlu1 %297  ;;  %v2014_v58 = vpop.xlane.xlu0 %294 }
  0xbf   : > { %v2016_v20 = vpop.xlane.xlu1 %303  ;;  %v2018_v21 = vpop.xlane.xlu0 %300 }
  0xc3   : > { %v2020_v59 = vpop.xlane.xlu1 %309  ;;  %v2022_v62 = vpop.xlane.xlu0 %306 }
  0xc7   : > { %v2024_v24 = vpop.xlane.xlu1 %315  ;;  %v2026_v25 = vpop.xlane.xlu0 %312 }
  0xcb   : > { %v2028_v63 = vpop.xlane.xlu1 %321  ;;  %v2030_v6 = vpop.xlane.xlu0 %318 }
  0xcf   : > { %v2032_v28 = vpop.xlane.xlu1 %327  ;;  %v2034_v29 = vpop.xlane.xlu0 %324 }
  0xd3   : > { %v2036_v7 = vpop.xlane.xlu1 %333  ;;  %v2038_v14 = vpop.xlane.xlu0 %330 }
  0xd7   : > { %v2040_v32 = vpop.xlane.xlu1 %339  ;;  %v2042_v33 = vpop.xlane.xlu0 %336 }
  0xdb   : > { %v2044_v15 = vpop.xlane.xlu1 %345  ;;  %v2046_v22 = vpop.xlane.xlu0 %342 }
  0xdf   : > { %v2048_v36 = vpop.xlane.xlu1 %351  ;;  %v2050_v37 = vpop.xlane.xlu0 %348 }
  0xe3   : > { %v2052_v23 = vpop.xlane.xlu1 %357  ;;  %v2054_v26 = vpop.xlane.xlu0 %354 }
  0xe7   : > { %v2056_v40 = vpop.xlane.xlu1 %363  ;;  %v2058_v41 = vpop.xlane.xlu0 %360 }
  0xeb   : > { %v2062_v30 = vpop.xlane.xlu1 %369  ;;  %v2064_v31 = vpop.xlane.xlu0 %366 }
  0xef   : > { %v414_v34 = vpop.xlane.xlu1 %413  ;;  %v411_v35 = vpop.xlane.xlu0 %410 }
  0xf0   : > { %v562_v38 = vmul.f32 0.020408163, %v414_v34  ;;  %v561_v5 = vmul.f32 0.020408163, %v411_v35 }
  0xf2   : > { %v638_v53 = vsub.f32 %v562_v38, %v600_v49  ;;  %v637_v1 = vsub.f32 %v561_v5, %v599_v45  ;;  %v604_v45 = vmul.f32 %v2082_v3, %v2082_v3  ;;  %v2098_v38 = vmul.f32 0.020408163, %v2004_v18 }
  0xf3   : > { %v420_v56 = vpop.xlane.xlu1 %419  ;;  %v417_v57 = vpop.xlane.xlu0 %416  ;;  %v2110_v18 = vmul.f32 0.020408163, %v2008_v19 }
  0xf4   : > { %v714_v2 = vadd.f32 0.001, %v638_v53  ;;  %v713_v60 = vadd.f32 0.001, %v637_v1  ;;  %v564_v61 = vmul.f32 0.020408163, %v420_v56 }
  0xf5   : > { %v563_v46 = vmul.f32 0.020408163, %v417_v57  ;;  %v676_v56 = vld [vmem:[%s2095_s21 + $0x8] sm:$0xff]  ;;  %v605_v57 = vmul.f32 %v2089_v12, %v2089_v12 }
  0xf6   : > { %1537 = vrsqrt.f32 %v714_v2  ;;  %v640_v43 = vsub.f32 %v564_v61, %v602_v42 }
  0xf7   : > { %1539 = vrsqrt.f32 %v713_v60  ;;  %v639_v4 = vsub.f32 %v563_v46, %v601_v0  ;;  %v426_v8 = vpop.xlane.xlu1 %425  ;;  %v423_v9 = vpop.xlane.xlu0 %422  ;;  %v675_v60 = vld [vmem:[%s2095_s21] sm:$0xff]  ;;  %v608_v0 = vmul.f32 %v2098_v38, %v2098_v38 }
  0xf8   : > { %v566_v47 = vmul.f32 0.020408163, %v426_v8  ;;  %v565_v11 = vmul.f32 0.020408163, %v423_v9  ;;  %v716_v50 = vadd.f32 0.001, %v640_v43 }
  0xf9   : > { %v715_v13 = vadd.f32 0.001, %v639_v4 }
  0xfa   : > { %v641_v34 = vsub.f32 %v565_v11, %v603_v10  ;;  %v642_v5 = vsub.f32 %v566_v47, %v604_v45  ;;  %v606_v11 = vmul.f32 %v2102_v54, %v2102_v54  ;;  %v677_v45 = vld [vmem:[%s2095_s21 + $0x10] sm:$0xff] }
  0xfb   : > { %1541 = vrsqrt.f32 %v715_v13  ;;  %v432_v35 = vpop.xlane.xlu1 %431  ;;  %v429_v49 = vpop.xlane.xlu0 %428 }
  0xfc   : > { %1543 = vrsqrt.f32 %v716_v50  ;;  %v717_v53 = vadd.f32 0.001, %v641_v34  ;;  %v567_v1 = vmul.f32 0.020408163, %v429_v49  ;;  %v718_v46 = vadd.f32 0.001, %v642_v5 }
  0xfd   : > { %v568_v51 = vmul.f32 0.020408163, %v432_v35  ;;  %v2119_v50 = vmul.f32 0.020408163, %v2006_v16  ;;  %v610_v34 = vmul.f32 %v2110_v18, %v2110_v18  ;;  %v2126_v35 = vmul.f32 0.020408163, %v2012_v55 }
  0xfe   : > { %1545 = vrsqrt.f32 %v717_v53  ;;  %v643_v8 = vsub.f32 %v567_v1, %v605_v57  ;;  %v2134_v55 = vmul.f32 0.020408163, %v2010_v17 }
  0xff   : > { %v438_v42 = vpop.xlane.xlu1 %437  ;;  %v435_v2 = vpop.xlane.xlu0 %434  ;;  %1547 = vrsqrt.f32 %v718_v46  ;;  %v644_v16 = vsub.f32 %v568_v51, %v606_v11  ;;  %v612_v46 = vmul.f32 %v2126_v35, %v2126_v35  ;;  %v2140_v51 = vmul.f32 0.020408163, %v2016_v20 }
 0x100   : > { %v1538_v61 = vpop.eup %1537  ;;  %v570_v43 = vmul.f32 0.020408163, %v438_v42  ;;  %v719_v1 = vadd.f32 0.001, %v643_v8  ;;  %2783 = vst [vmem:[#allocation2_spill] sm:$0xff] %v2134_v55 }
 0x101   : > { %v1540_v4 = vpop.eup %1539  ;;  %v2112_v9 = vmul.f32 %v1538_v61, %v676_v56  ;;  %v569_v56 = vmul.f32 0.020408163, %v435_v2  ;;  %v607_v61 = vmul.f32 %v2119_v50, %v2119_v50  ;;  %v2148_v20 = vmul.f32 0.020408163, %v2014_v58 }
 0x102   : > { %v646_v10 = vsub.f32 %v570_v43, %v608_v0  ;;  %v2114_v47 = vmul.f32 %v1540_v4, %v675_v60  ;;  %v678_v4 = vld [vmem:[%s2095_s21 + $0x18] sm:$0xff] }
 0x103   : > { %v444_v13 = vpop.xlane.xlu1 %443  ;;  %948 = vperm.xlu1 %1536, %v2112_v9   ;;  %v441_v19 = vpop.xlane.xlu0 %440  ;;  %v645_v11 = vsub.f32 %v569_v56, %v607_v61  ;;  %2784 = vst [vmem:[#allocation3_spill] sm:$0xff] %v2148_v20 }
 0x104   : > { %v722_v49 = vadd.f32 0.001, %v646_v10  ;;  %v572_v5 = vmul.f32 0.020408163, %v444_v13  ;;  %943 = vperm.xlu0 %1535, %v2114_v47   ;;  %v720_v10 = vadd.f32 0.001, %v644_v16  ;;  %v614_v16 = vmul.f32 %v2140_v51, %v2140_v51 }
 0x105   : > { %v1542_v53 = vpop.eup %1541  ;;  %v571_v13 = vmul.f32 0.020408163, %v441_v19  ;;  %v2154_v19 = vmul.f32 0.020408163, %v2020_v59  ;;  %v611_v59 = vmul.f32 %v2148_v20, %v2148_v20 }
 0x106   : > { %1549 = vrsqrt.f32 %v722_v49  ;;  %v648_v57 = vsub.f32 %v572_v5, %v610_v34  ;;  %v2129_v42 = vmul.f32 %v1542_v53, %v677_v45  ;;  %v1544_v60 = vpop.eup %1543  ;;  %v609_v49 = vmul.f32 %v2134_v55, %v2134_v55  ;;  %v686_v55 = vld [vmem:[%s2095_s21 + $0x58] sm:$0xff] }
 0x107   : > { %v450_v0 = vpop.xlane.xlu1 %449  ;;  %v447_v43 = vpop.xlane.xlu0 %446  ;;  %1551 = vrsqrt.f32 %v719_v1  ;;  %v2143_v45 = vmul.f32 %v1544_v60, %v678_v4  ;;  %2785 = vst [vmem:[#allocation4_spill] sm:$0xff] %v2154_v19  ;;  %v721_v60 = vadd.f32 0.001, %v645_v11  ;;  %v680_v11 = vld [vmem:[%s2095_s21 + $0x28] sm:$0xff] }
 0x108   : > { %v724_v2 = vadd.f32 0.001, %v648_v57  ;;  %v574_v8 = vmul.f32 0.020408163, %v450_v0  ;;  %953 = vperm.xlu1 %1536, %v2129_v42   ;;  %v1546_v34 = vpop.eup %1545  ;;  %v679_v57 = vld [vmem:[%s2095_s21 + $0x20] sm:$0xff]  ;;  %v647_v61 = vsub.f32 %v571_v13, %v609_v49 }
 0x109   : > { %v573_v58 = vmul.f32 0.020408163, %v447_v43  ;;  %v2158_v0 = vmul.f32 0.020408163, %v2018_v21  ;;  %v616_v21 = vmul.f32 %v2154_v19, %v2154_v19 }
 0x10a   : > { %1553 = vrsqrt.f32 %v724_v2  ;;  %v650_v17 = vsub.f32 %v574_v8, %v612_v46  ;;  %v2160_v46 = vmul.f32 %v1546_v34, %v679_v57  ;;  %v684_v2 = vld [vmem:[%s2095_s21 + $0x48] sm:$0xff]  ;;  %v1548_v8 = vpop.eup %1547  ;;  %v723_v57 = vadd.f32 0.001, %v647_v61 }
 0x10b   : > { %v456_v5 = vpop.xlane.xlu1 %455  ;;  %v453_v53 = vpop.xlane.xlu0 %452  ;;  %1555 = vrsqrt.f32 %v720_v10  ;;  %2786 = vst [vmem:[#allocation5_spill] sm:$0xff] %v2158_v0  ;;  %v2176_v20 = vmul.f32 %v1548_v8, %v680_v11 }
 0x10c   : > { %v726_v1 = vadd.f32 0.001, %v650_v17  ;;  %v576_v56 = vmul.f32 0.020408163, %v456_v5  ;;  %958 = vperm.xlu1 %1536, %v2143_v45   ;;  %v2166_v17 = vmul.f32 0.020408163, %v2024_v24  ;;  %v613_v24 = vmul.f32 %v2158_v0, %v2158_v0 }
 0x10d   : > { %v575_v49 = vmul.f32 0.020408163, %v453_v53  ;;  %v2180_v53 = vmul.f32 0.020408163, %v2022_v62  ;;  %v688_v0 = vld [vmem:[%s2095_s21 + $0x68] sm:$0xff] }
 0x10e   : > { %1557 = vrsqrt.f32 %v726_v1  ;;  %v652_v4 = vsub.f32 %v576_v56, %v614_v16  ;;  %2787 = vst [vmem:[#allocation6_spill] sm:$0xff] %v2166_v17  ;;  %v649_v16 = vsub.f32 %v573_v58, %v611_v59  ;;  %v681_v58 = vld [vmem:[%s2095_s21 + $0x30] sm:$0xff]  ;;  %v2187_v59 = vmul.f32 0.020408163, %v2028_v63 }
 0x10f   : > { %v462_v5 = vpop.xlane.xlu1 %461  ;;  %v459_v10 = vpop.xlane.xlu0 %458  ;;  %1559 = vrsqrt.f32 %v721_v60  ;;  %2788 = vst [vmem:[#allocation7_spill] sm:$0xff] %v2180_v53  ;;  %v651_v8 = vsub.f32 %v575_v49, %v613_v24  ;;  %v615_v63 = vmul.f32 %v2180_v53, %v2180_v53  ;;  %v2198_v49 = vmul.f32 0.020408163, %v2026_v25 }
 0x110   : > { %v1550_v43 = vpop.eup %1549  ;;  %v728_v13 = vadd.f32 0.001, %v652_v4  ;;  %v578_v34 = vmul.f32 0.020408163, %v462_v5  ;;  %963 = vperm.xlu1 %1536, %v2160_v46   ;;  %v618_v4 = vmul.f32 %v2166_v17, %v2166_v17  ;;  %2789 = vst [vmem:[#allocation8_spill] sm:$0xff] %v2187_v59 }
 0x111   : > { %v2172_v1 = vmul.f32 %v1550_v43, %v684_v2  ;;  %v1552_v19 = vpop.eup %1551  ;;  %v725_v62 = vadd.f32 0.001, %v649_v16  ;;  %v577_v43 = vmul.f32 0.020408163, %v459_v10  ;;  %2790 = vst [vmem:[#allocation9_spill] sm:$0xff] %v2198_v49  ;;  %v682_v10 = vld [vmem:[%s2095_s21 + $0x38] sm:$0xff] }
 0x112   : > { %1561 = vrsqrt.f32 %v728_v13  ;;  %v654_v56 = vsub.f32 %v578_v34, %v616_v21  ;;  %v2192_v34 = vmul.f32 %v1552_v19, %v681_v58  ;;  %v2201_v24 = vmul.f32 0.020408163, %v2032_v28 }
 0x113   : > { %v468_v60 = vpop.xlane.xlu1 %467  ;;  %988 = vperm.xlu0 %1535, %v2172_v1   ;;  %v465_v61 = vpop.xlane.xlu0 %464  ;;  %1563 = vrsqrt.f32 %v723_v57  ;;  %v620_v19 = vmul.f32 %v2187_v59, %v2187_v59  ;;  %v653_v25 = vsub.f32 %v577_v43, %v615_v63  ;;  %v617_v59 = vmul.f32 %v2198_v49, %v2198_v49 }
 0x114   : > { %v1554_v2 = vpop.eup %1553  ;;  %v730_v5 = vadd.f32 0.001, %v654_v56  ;;  %v580_v11 = vmul.f32 0.020408163, %v468_v60  ;;  %968 = vperm.xlu1 %1536, %v2176_v20   ;;  %2791 = vst [vmem:[#allocation10_spill] sm:$0xff] %v2201_v24 }
 0x115   : > { %v2190_v21 = vmul.f32 %v1554_v2, %v686_v55  ;;  %v1556_v17 = vpop.eup %1555  ;;  %v727_v56 = vadd.f32 0.001, %v651_v8  ;;  %v579_v28 = vmul.f32 0.020408163, %v465_v61  ;;  %v2216_v8 = vmul.f32 0.020408163, %v2030_v6 }
 0x116   : > { %1565 = vrsqrt.f32 %v730_v5  ;;  %v656_v13 = vsub.f32 %v580_v11, %v618_v4  ;;  %v2210_v5 = vmul.f32 %v1556_v17, %v682_v10  ;;  %v690_v11 = vld [vmem:[%s2095_s21 + $0x78] sm:$0xff]  ;;  %v683_v61 = vld [vmem:[%s2095_s21 + $0x40] sm:$0xff]  ;;  %v2223_v17 = vmul.f32 0.020408163, %v2036_v7  ;;  %v692_v7 = vld [vmem:[%s2095_s21 + $0x88] sm:$0xff] }
 0x117   : > { %v474_v57 = vpop.xlane.xlu1 %473  ;;  %998 = vperm.xlu0 %1535, %v2190_v21   ;;  %v471_v55 = vpop.xlane.xlu0 %470  ;;  %1567 = vrsqrt.f32 %v725_v62  ;;  %2792 = vst [vmem:[#allocation11_spill] sm:$0xff] %v2216_v8  ;;  %v729_v6 = vadd.f32 0.001, %v653_v25  ;;  %v655_v10 = vsub.f32 %v579_v28, %v617_v59 }
 0x118   : > { %v1558_v16 = vpop.eup %1557  ;;  %v732_v4 = vadd.f32 0.001, %v656_v13  ;;  %v582_v60 = vmul.f32 0.020408163, %v474_v57  ;;  %973 = vperm.xlu1 %1536, %v2192_v34   ;;  %v622_v13 = vmul.f32 %v2201_v24, %v2201_v24  ;;  %2793 = vst [vmem:[#allocation12_spill] sm:$0xff] %v2223_v17  ;;  %v624_v28 = vmul.f32 %v2223_v17, %v2223_v17 }
 0x119   : > { %v2208_v58 = vmul.f32 %v1558_v16, %v688_v0  ;;  %v1560_v53 = vpop.eup %1559  ;;  %v581_v16 = vmul.f32 0.020408163, %v471_v55  ;;  %v685_v55 = vld [vmem:[%s2095_s21 + $0x50] sm:$0xff] }
 0x11a   : > { %1569 = vrsqrt.f32 %v732_v4  ;;  %v658_v2 = vsub.f32 %v582_v60, %v620_v19  ;;  %v2229_v4 = vmul.f32 0.020408163, %v2034_v29  ;;  %v2231_v49 = vmul.f32 %v1560_v53, %v683_v61 }
 0x11b   : > { %v480_v62 = vpop.xlane.xlu1 %479  ;;  %1008 = vperm.xlu0 %1535, %v2208_v58   ;;  %v477_v0 = vpop.xlane.xlu0 %476  ;;  %1571 = vrsqrt.f32 %v727_v56  ;;  %v619_v56 = vmul.f32 %v2216_v8, %v2216_v8  ;;  %v694_v8 = vld [vmem:[%s2095_s21 + $0x98] sm:$0xff] }
 0x11c   : > { %v1562_v43 = vpop.eup %1561  ;;  %v734_v63 = vadd.f32 0.001, %v658_v2  ;;  %v584_v57 = vmul.f32 0.020408163, %v480_v62  ;;  %978 = vperm.xlu1 %1536, %v2210_v5   ;;  %2794 = vst [vmem:[#allocation13_spill] sm:$0xff] %v2229_v4 }
 0x11d   : > { %v2226_v19 = vmul.f32 %v1562_v43, %v690_v11  ;;  %v1564_v24 = vpop.eup %1563  ;;  %v2237_v2 = vmul.f32 0.020408163, %v2040_v32  ;;  %v583_v11 = vmul.f32 0.020408163, %v477_v0  ;;  %v731_v62 = vadd.f32 0.001, %v655_v10 }
 0x11e   : > { %1573 = vrsqrt.f32 %v734_v63  ;;  %v660_v60 = vsub.f32 %v584_v57, %v622_v13  ;;  %v657_v32 = vsub.f32 %v581_v16, %v619_v56  ;;  %v621_v43 = vmul.f32 %v2229_v4, %v2229_v4  ;;  %v687_v16 = vld [vmem:[%s2095_s21 + $0x60] sm:$0xff] }
 0x11f   : > { %2795 = vst [vmem:[#allocation14_spill] sm:$0xff] %v2237_v2  ;;  %v486_v25 = vpop.xlane.xlu1 %485  ;;  %1018 = vperm.xlu0 %1535, %v2226_v19   ;;  %v483_v59 = vpop.xlane.xlu0 %482  ;;  %1575 = vrsqrt.f32 %v729_v6  ;;  %v2248_v57 = vmul.f32 %v1564_v24, %v685_v55  ;;  %v2252_v0 = vmul.f32 0.020408163, %v2038_v14  ;;  %v2259_v56 = vmul.f32 0.020408163, %v2044_v15 }
 0x120   : > { %v1566_v29 = vpop.eup %1565  ;;  %v736_v53 = vadd.f32 0.001, %v660_v60  ;;  %v586_v13 = vmul.f32 0.020408163, %v486_v25  ;;  %983 = vperm.xlu1 %1536, %v2231_v49   ;;  %v626_v60 = vmul.f32 %v2237_v2, %v2237_v2  ;;  %v659_v24 = vsub.f32 %v583_v11, %v621_v43  ;;  %v696_v2 = vld [vmem:[%s2095_s21 + $0xa8] sm:$0xff] }
 0x121   : > { %v2244_v61 = vmul.f32 %v1566_v29, %v692_v7  ;;  %v1568_v17 = vpop.eup %1567  ;;  %2796 = vst [vmem:[#allocation15_spill] sm:$0xff] %v2252_v0  ;;  %2797 = vst [vmem:[#allocation16_spill] sm:$0xff] %v2259_v56  ;;  %v733_v14 = vadd.f32 0.001, %v657_v32  ;;  %v585_v29 = vmul.f32 0.020408163, %v483_v59  ;;  %v623_v15 = vmul.f32 %v2252_v0, %v2252_v0 }
 0x122   : > { %1577 = vrsqrt.f32 %v736_v53  ;;  %v662_v63 = vsub.f32 %v586_v13, %v624_v28  ;;  %v2264_v4 = vmul.f32 %v1568_v17, %v687_v16  ;;  %v2270_v11 = vmul.f32 0.020408163, %v2042_v33  ;;  %v689_v59 = vld [vmem:[%s2095_s21 + $0x70] sm:$0xff] }
 0x123   : > { %v492_v6 = vpop.xlane.xlu1 %491  ;;  %1028 = vperm.xlu0 %1535, %v2244_v61   ;;  %v489_v10 = vpop.xlane.xlu0 %488  ;;  %1579 = vrsqrt.f32 %v731_v62  ;;  %v2273_v43 = vmul.f32 0.020408163, %v2048_v36  ;;  %v628_v17 = vmul.f32 %v2259_v56, %v2259_v56  ;;  %v661_v33 = vsub.f32 %v585_v29, %v623_v15 }
 0x124   : > { %v1570_v7 = vpop.eup %1569  ;;  %v738_v25 = vadd.f32 0.001, %v662_v63  ;;  %v588_v55 = vmul.f32 0.020408163, %v492_v6  ;;  %993 = vperm.xlu1 %1536, %v2248_v57   ;;  %2798 = vst [vmem:[#allocation17_spill] sm:$0xff] %v2270_v11  ;;  %v625_v56 = vmul.f32 %v2270_v11, %v2270_v11 }
 0x125   : > { %v2262_v28 = vmul.f32 %v1570_v7, %v694_v8  ;;  %v1572_v53 = vpop.eup %1571  ;;  %2799 = vst [vmem:[#allocation18_spill] sm:$0xff] %v2273_v43  ;;  %v735_v63 = vadd.f32 0.001, %v659_v24  ;;  %v587_v36 = vmul.f32 0.020408163, %v489_v10  ;;  %v691_v10 = vld [vmem:[%s2095_s21 + $0x80] sm:$0xff] }
 0x126   : > { %1581 = vrsqrt.f32 %v738_v25  ;;  %v664_v13 = vsub.f32 %v588_v55, %v626_v60  ;;  %v2282_v25 = vmul.f32 %v1572_v53, %v689_v59  ;;  %v698_v55 = vld [vmem:[%s2095_s21 + $0xb8] sm:$0xff]  ;;  %v2288_v24 = vmul.f32 0.020408163, %v2046_v22 }
 0x127   : > { %v498_v62 = vpop.xlane.xlu1 %497  ;;  %1038 = vperm.xlu0 %1535, %v2262_v28   ;;  %v495_v8 = vpop.xlane.xlu0 %494  ;;  %1583 = vrsqrt.f32 %v733_v14  ;;  %v2295_v53 = vmul.f32 0.020408163, %v2052_v23  ;;  %v737_v22 = vadd.f32 0.001, %v661_v33  ;;  %v663_v59 = vsub.f32 %v587_v36, %v625_v56  ;;  %v700_v23 = vld [vmem:[%s2095_s21 + $0xc8] sm:$0xff] }
 0x128   : > { %v1574_v32 = vpop.eup %1573  ;;  %v740_v60 = vadd.f32 0.001, %v664_v13  ;;  %v590_v6 = vmul.f32 0.020408163, %v498_v62  ;;  %1003 = vperm.xlu1 %1536, %v2264_v4   ;;  %2800 = vst [vmem:[#allocation19_spill] sm:$0xff] %v2288_v24  ;;  %v630_v13 = vmul.f32 %v2273_v43, %v2273_v43 }
 0x129   : > { %v2280_v16 = vmul.f32 %v1574_v32, %v696_v2  ;;  %v1576_v0 = vpop.eup %1575  ;;  %2801 = vst [vmem:[#allocation20_spill] sm:$0xff] %v2295_v53  ;;  %v589_v32 = vmul.f32 0.020408163, %v495_v8  ;;  %v693_v8 = vld [vmem:[%s2095_s21 + $0x90] sm:$0xff]  ;;  %v632_v36 = vmul.f32 %v2295_v53, %v2295_v53 }
 0x12a   : > { %1585 = vrsqrt.f32 %v740_v60  ;;  %v666_v7 = vsub.f32 %v590_v6, %v628_v17  ;;  %v2301_v60 = vmul.f32 0.020408163, %v2050_v37  ;;  %v2303_v11 = vmul.f32 %v1576_v0, %v691_v10 }
 0x12b   : > { %v504_v14 = vpop.xlane.xlu1 %503  ;;  %1048 = vperm.xlu0 %1535, %v2280_v16   ;;  %v501_v2 = vpop.xlane.xlu0 %500  ;;  %1587 = vrsqrt.f32 %v735_v63  ;;  %v627_v63 = vmul.f32 %v2288_v24, %v2288_v24  ;;  %v702_v24 = vld [vmem:[%s2095_s21 + $0xd8] sm:$0xff] }
 0x12c   : > { %v1578_v29 = vpop.eup %1577  ;;  %v742_v15 = vadd.f32 0.001, %v666_v7  ;;  %v592_v62 = vmul.f32 0.020408163, %v504_v14  ;;  %1013 = vperm.xlu1 %1536, %v2282_v25   ;;  %2802 = vst [vmem:[#allocation21_spill] sm:$0xff] %v2301_v60 }
 0x12d   : > { %v2298_v17 = vmul.f32 %v1578_v29, %v698_v55  ;;  %v1580_v43 = vpop.eup %1579  ;;  %v2309_v7 = vmul.f32 0.020408163, %v2056_v40  ;;  %v591_v55 = vmul.f32 0.020408163, %v501_v2  ;;  %v739_v14 = vadd.f32 0.001, %v663_v59 }
 0x12e   : > { %1589 = vrsqrt.f32 %v742_v15  ;;  %v668_v6 = vsub.f32 %v592_v62, %v630_v13  ;;  %v665_v40 = vsub.f32 %v589_v32, %v627_v63  ;;  %v629_v29 = vmul.f32 %v2301_v60, %v2301_v60  ;;  %v695_v59 = vld [vmem:[%s2095_s21 + $0xa0] sm:$0xff] }
 0x12f   : > { %2803 = vst [vmem:[#allocation22_spill] sm:$0xff] %v2309_v7  ;;  %v510_v33 = vpop.xlane.xlu1 %509  ;;  %1058 = vperm.xlu0 %1535, %v2298_v17   ;;  %v507_v56 = vpop.xlane.xlu0 %506  ;;  %1591 = vrsqrt.f32 %v737_v22  ;;  %v2320_v62 = vmul.f32 %v1580_v43, %v693_v8  ;;  %v2324_v2 = vmul.f32 0.020408163, %v2054_v26 }
 0x130   : > { %v1582_v37 = vpop.eup %1581  ;;  %v744_v0 = vadd.f32 0.001, %v668_v6  ;;  %v594_v13 = vmul.f32 0.020408163, %v510_v33  ;;  %1023 = vperm.xlu1 %1536, %v2303_v11   ;;  %v634_v6 = vmul.f32 %v2309_v7, %v2309_v7  ;;  %v667_v63 = vsub.f32 %v591_v55, %v629_v29  ;;  %v704_v7 = vld [vmem:[%s2095_s21 + $0xe8] sm:$0xff] }
 0x131   : > { %v2316_v10 = vmul.f32 %v1582_v37, %v700_v23  ;;  %v1584_v53 = vpop.eup %1583  ;;  %2804 = vst [vmem:[#allocation23_spill] sm:$0xff] %v2324_v2  ;;  %v2331_v23 = vmul.f32 0.020408163, %v2062_v30  ;;  %v741_v8 = vadd.f32 0.001, %v665_v40  ;;  %v631_v30 = vmul.f32 %v2324_v2, %v2324_v2 }
 0x132   : > { %1593 = vrsqrt.f32 %v744_v0  ;;  %v670_v15 = vsub.f32 %v594_v13, %v632_v36  ;;  %v593_v37 = vmul.f32 0.020408163, %v507_v56  ;;  %v2336_v60 = vmul.f32 %v1584_v53, %v695_v59 }
 0x133   : > { %v516_v22 = vpop.xlane.xlu1 %515  ;;  %1068 = vperm.xlu0 %1535, %v2316_v10   ;;  %v513_v26 = vpop.xlane.xlu0 %512  ;;  %1595 = vrsqrt.f32 %v739_v14  ;;  %v2342_v55 = vmul.f32 0.020408163, %v2058_v41  ;;  %v697_v14 = vld [vmem:[%s2095_s21 + $0xb0] sm:$0xff]  ;;  %v743_v40 = vadd.f32 0.001, %v667_v63 }
 0x134   : > { %v1586_v32 = vpop.eup %1585  ;;  %v746_v43 = vadd.f32 0.001, %v670_v15  ;;  %v596_v33 = vmul.f32 0.020408163, %v516_v22  ;;  %1033 = vperm.xlu1 %1536, %v2320_v62   ;;  %v595_v22 = vmul.f32 0.020408163, %v513_v26 }
 0x135   : > { %v2334_v36 = vmul.f32 %v1586_v32, %v702_v24  ;;  %v1588_v0 = vpop.eup %1587  ;;  %v636_v24 = vmul.f32 %v2331_v23, %v2331_v23  ;;  %v633_v63 = vmul.f32 %v2342_v55, %v2342_v55  ;;  %v699_v26 = vld [vmem:[%s2095_s21 + $0xc0] sm:$0xff] }
 0x136   : > { %1597 = vrsqrt.f32 %v746_v43  ;;  %v672_v13 = vsub.f32 %v596_v33, %v634_v6  ;;  %v669_v6 = vsub.f32 %v593_v37, %v631_v30  ;;  %v2351_v43 = vmul.f32 %v1588_v0, %v697_v14  ;;  %v706_v33 = vld [vmem:[%s2095_s21 + $0xf8] sm:$0xff] }
 0x137   : > { %v522_v29 = vpop.xlane.xlu1 %521  ;;  %1078 = vperm.xlu0 %1535, %v2334_v36   ;;  %1599 = vrsqrt.f32 %v741_v8  ;;  %v519_v32 = vpop.xlane.xlu0 %518  ;;  %v671_v0 = vsub.f32 %v595_v22, %v633_v63 }
 0x138   : > { %v1590_v56 = vpop.eup %1589  ;;  %v748_v15 = vadd.f32 0.001, %v672_v13  ;;  %v598_v53 = vmul.f32 0.020408163, %v522_v29  ;;  %1043 = vperm.xlu1 %1536, %v2336_v60   ;;  %v2357_v13 = vmul.f32 0.020408163, %v2064_v31 }
 0x139   : > { %v2349_v41 = vmul.f32 %v1590_v56, %v704_v7  ;;  %v1592_v2 = vpop.eup %1591  ;;  %v745_v37 = vadd.f32 0.001, %v669_v6  ;;  %v597_v30 = vmul.f32 0.020408163, %v519_v32  ;;  %v708_v31 = vld [vmem:[%s2095_s21 + $0x108] sm:$0xff] }
 0x13a   : > { %1601 = vrsqrt.f32 %v748_v15  ;;  %v674_v59 = vsub.f32 %v598_v53, %v636_v24  ;;  %v2364_v14 = vmul.f32 %v1592_v2, %v699_v26  ;;  %v635_v24 = vmul.f32 %v2357_v13, %v2357_v13 }
 0x13b   : > { %1088 = vperm.xlu0 %1535, %v2349_v41   ;;  %1603 = vrsqrt.f32 %v743_v40  ;;  %v701_v40 = vld [vmem:[%s2095_s21 + $0xd0] sm:$0xff]  ;;  %v747_v53 = vadd.f32 0.001, %v671_v0  ;;  %v712_v0 = vld [vmem:[%s2095_s21 + $0x128] sm:$0xff] }
 0x13c   : > { %v1594_v7 = vpop.eup %1593  ;;  %v750_v8 = vadd.f32 0.001, %v674_v59  ;;  %1053 = vperm.xlu1 %1536, %v2351_v43   ;;  %v673_v6 = vsub.f32 %v597_v30, %v635_v24  ;;  %v710_v59 = vld [vmem:[%s2095_s21 + $0x118] sm:$0xff]  ;;  %v705_v30 = vld [vmem:[%s2095_s21 + $0xf0] sm:$0xff] }
 0x13d   : > { %v2362_v29 = vmul.f32 %v1594_v7, %v706_v33  ;;  %v1596_v56 = vpop.eup %1595  ;;  %v703_v33 = vld [vmem:[%s2095_s21 + $0xe0] sm:$0xff] }
 0x13e   : > { %1605 = vrsqrt.f32 %v750_v8  ;;  %v2374_v2 = vmul.f32 %v1596_v56, %v701_v40  ;;  %v749_v26 = vadd.f32 0.001, %v673_v6  ;;  %v866_v56 = vmul.f32 %v2112_v9, %v2066_v44  ;;  %v707_v6 = vld [vmem:[%s2095_s21 + $0x100] sm:$0xff]  ;;  %v830_v44 = vld [vmem:[%s2391_s24 + $0x18] sm:$0xff] }
 0x13f   : > { %1098 = vperm.xlu0 %1535, %v2362_v29   ;;  %1607 = vrsqrt.f32 %v745_v37 }
 0x140   : > { %v1598_v15 = vpop.eup %1597  ;;  %1063 = vperm.xlu1 %1536, %v2364_v14   ;;  %1609 = vrsqrt.f32 %v747_v53 }
 0x141   : > { %v2372_v22 = vmul.f32 %v1598_v15, %v708_v31  ;;  %v1600_v32 = vpop.eup %1599  ;;  %1611 = vrsqrt.f32 %v749_v26  ;;  %v828_v15 = vld [vmem:[%s2391_s24 + $0x8] sm:$0xff]  ;;  %v870_v26 = vmul.f32 %v2176_v20, %v2082_v3  ;;  %v834_v3 = vld [vmem:[%s2391_s24 + $0x38] sm:$0xff]  ;;  %v827_v20 = vld [vmem:[%s2391_s24] sm:$0xff] }
 0x142   : > { %v2382_v37 = vmul.f32 %v1600_v32, %v703_v33  ;;  %v904_v32 = vsub.f32 %v828_v15, %v866_v56  ;;  %v865_v15 = vmul.f32 %v2114_v47, %v2060_v27  ;;  %v829_v27 = vld [vmem:[%s2391_s24 + $0x10] sm:$0xff]  ;;  %v876_v47 = vmul.f32 %v2190_v21, %v2110_v18  ;;  %v840_v18 = vld [vmem:[%s2391_s24 + $0x68] sm:$0xff] }
 0x143   : > { %1108 = vperm.xlu0 %1535, %v2372_v22   ;;  %v833_v21 = vld [vmem:[%s2391_s24 + $0x30] sm:$0xff] }
 0x144   : > { %v1602_v63 = vpop.eup %1601  ;;  %1073 = vperm.xlu1 %1536, %v2374_v2  }
 0x145   : > { %v2380_v7 = vmul.f32 %v1602_v63, %v710_v59  ;;  %v1604_v8 = vpop.eup %1603  ;;  %v868_v59 = vmul.f32 %v2143_v45, %v2070_v48  ;;  %v709_v63 = vld [vmem:[%s2095_s21 + $0x110] sm:$0xff]  ;;  %v711_v48 = vld [vmem:[%s2095_s21 + $0x120] sm:$0xff]  ;;  %v872_v45 = vmul.f32 %v2210_v5, %v2102_v54  ;;  %v867_v54 = vmul.f32 %v2129_v42, %v2074_v52 }
 0x146   : > { %v2398_v40 = vmul.f32 %v1604_v8, %v705_v30  ;;  %v832_v30 = vld [vmem:[%s2391_s24 + $0x28] sm:$0xff]  ;;  %v903_v5 = vsub.f32 %v827_v20, %v865_v15  ;;  %v878_v52 = vmul.f32 %v2208_v58, %v2126_v35  ;;  %v842_v35 = vld [vmem:[%s2391_s24 + $0x78] sm:$0xff]  ;;  %v835_v58 = vld [vmem:[%s2391_s24 + $0x40] sm:$0xff] }
 0x147   : > { %1118 = vperm.xlu0 %1535, %v2380_v7   ;;  %v906_v8 = vsub.f32 %v830_v44, %v868_v59  ;;  %v908_v56 = vsub.f32 %v832_v30, %v870_v26  ;;  %v910_v59 = vsub.f32 %v834_v3, %v872_v45  ;;  %v871_v26 = vmul.f32 %v2192_v34, %v2089_v12  ;;  %v2805_v12 = vld [vmem:[#allocation4_spill] sm:$0xff]  ;;  %v2806_v45 = vld [vmem:[#allocation2_spill] sm:$0xff]  ;;  %v2808_v20 = vld [vmem:[#allocation3_spill] sm:$0xff] }
 0x148   : > { %v1606_v31 = vpop.eup %1605  ;;  %1083 = vperm.xlu1 %1536, %v2382_v37   ;;  %v873_v30 = vmul.f32 %v2231_v49, %v2119_v50  ;;  %v882_v34 = vmul.f32 %v2244_v61, %v2805_v12  ;;  %v2807_v50 = vld [vmem:[#allocation6_spill] sm:$0xff]  ;;  %v846_v61 = vld [vmem:[%s2391_s24 + $0x98] sm:$0xff] }
 0x149   : > { %v2396_v24 = vmul.f32 %v1606_v31, %v712_v0  ;;  %v1608_v53 = vpop.eup %1607  ;;  %v884_v49 = vmul.f32 %v2262_v28, %v2807_v50  ;;  %v848_v28 = vld [vmem:[%s2391_s24 + $0xa8] sm:$0xff]  ;;  %v854_v12 = vld [vmem:[%s2391_s24 + $0xd8] sm:$0xff] }
 0x14a   : > { %v2406_v33 = vmul.f32 %v1608_v53, %v707_v6  ;;  %v1610_v9 = vpop.eup %1609  ;;  %v874_v6 = vmul.f32 %v2172_v1, %v2098_v38  ;;  %v838_v38 = vld [vmem:[%s2391_s24 + $0x58] sm:$0xff]  ;;  %v831_v1 = vld [vmem:[%s2391_s24 + $0x20] sm:$0xff]  ;;  %v911_v15 = vsub.f32 %v835_v58, %v873_v30  ;;  %v845_v30 = vld [vmem:[%s2391_s24 + $0x90] sm:$0xff] }
 0x14b   : > { %1128 = vperm.xlu0 %1535, %v2396_v24   ;;  %v2413_v0 = vmul.f32 %v1610_v9, %v709_v63  ;;  %v1612_v31 = vpop.eup %1611  ;;  %v869_v9 = vmul.f32 %v2160_v46, %v2076_v39  ;;  %v905_v63 = vsub.f32 %v829_v27, %v867_v54  ;;  %v914_v42 = vsub.f32 %v838_v38, %v876_v47  ;;  %v839_v54 = vld [vmem:[%s2391_s24 + $0x60] sm:$0xff]  ;;  %v2810_v27 = vld [vmem:[#allocation5_spill] sm:$0xff] }
 0x14c   : > { %1093 = vperm.xlu1 %1536, %v2398_v40   ;;  %v2422_v53 = vmul.f32 %v1612_v31, %v711_v48  ;;  %v880_v39 = vmul.f32 %v2226_v19, %v2140_v51  ;;  %v916_v46 = vsub.f32 %v840_v18, %v878_v52  ;;  %v909_v31 = vsub.f32 %v833_v21, %v871_v26  ;;  %v844_v51 = vld [vmem:[%s2391_s24 + $0x88] sm:$0xff]  ;;  %v837_v19 = vld [vmem:[%s2391_s24 + $0x50] sm:$0xff]  ;;  %v850_v52 = vld [vmem:[%s2391_s24 + $0xb8] sm:$0xff] }
 0x14d   : > { %v920_v3 = vsub.f32 %v844_v51, %v882_v34  ;;  %v879_v47 = vmul.f32 %v2282_v25, %v2810_v27  ;;  %v843_v26 = vld [vmem:[%s2391_s24 + $0x80] sm:$0xff]  ;;  %v2813_v25 = vld [vmem:[#allocation12_spill] sm:$0xff]  ;;  %v2816_v34 = vld [vmem:[#allocation11_spill] sm:$0xff] }
 0x14e   : > { %v918_v48 = vsub.f32 %v842_v35, %v880_v39  ;;  %v852_v39 = vld [vmem:[%s2391_s24 + $0xc8] sm:$0xff] }
 0x14f   : > { %1176 = vperm.xlu0 %1535, %v904_v32   ;;  %v836_v32 = vld [vmem:[%s2391_s24 + $0x48] sm:$0xff] }
 0x150   : > { %1103 = vperm.xlu1 %1536, %v2406_v33   ;;  %v912_v44 = vsub.f32 %v836_v32, %v874_v6  ;;  %v877_v6 = vmul.f32 %v2264_v4, %v2808_v20  ;;  %v922_v32 = vsub.f32 %v846_v61, %v884_v49  ;;  %v2811_v4 = vld [vmem:[#allocation10_spill] sm:$0xff]  ;;  %v849_v49 = vld [vmem:[%s2391_s24 + $0xb0] sm:$0xff]  ;;  %v2820_v61 = vld [vmem:[#allocation15_spill] sm:$0xff] }
 0x153   : > { %1186 = vperm.xlu0 %1535, %v906_v8   ;;  %v907_v8 = vsub.f32 %v831_v1, %v869_v9  ;;  %v841_v9 = vld [vmem:[%s2391_s24 + $0x70] sm:$0xff] }
 0x154   : > { %1113 = vperm.xlu1 %1536, %v2413_v0   ;;  %v917_v1 = vsub.f32 %v841_v9, %v879_v47  ;;  %v860_v47 = vld [vmem:[%s2391_s24 + $0x108] sm:$0xff] }
 0x157   : > { %1196 = vperm.xlu0 %1535, %v908_v56   ;;  %v875_v56 = vmul.f32 %v2248_v57, %v2806_v45  ;;  %v2809_v57 = vld [vmem:[#allocation8_spill] sm:$0xff] }
 0x158   : > { %1123 = vperm.xlu1 %1536, %v2422_v53  }
 0x15b   : > { %1206 = vperm.xlu0 %1535, %v910_v59   ;;  %v913_v59 = vsub.f32 %v837_v19, %v875_v56  ;;  %v856_v19 = vld [vmem:[%s2391_s24 + $0xe8] sm:$0xff] }
 0x15c   : > { %1171 = vperm.xlu1 %1536, %v903_v5   ;;  %v886_v5 = vmul.f32 %v2280_v16, %v2809_v57  ;;  %v851_v57 = vld [vmem:[%s2391_s24 + $0xc0] sm:$0xff] }
 0x15e   : > { %v924_v38 = vsub.f32 %v848_v28, %v886_v5  ;;  %v2821_v5 = vld [vmem:[#allocation20_spill] sm:$0xff] }
 0x15f   : > { %1216 = vperm.xlu0 %1535, %v912_v44   ;;  %v915_v44 = vsub.f32 %v839_v54, %v877_v6 }
 0x160   : > { %1181 = vperm.xlu1 %1536, %v905_v63   ;;  %v888_v63 = vmul.f32 %v2298_v17, %v2811_v4  ;;  %v2823_v4 = vld [vmem:[#allocation22_spill] sm:$0xff] }
 0x162   : > { %v926_v18 = vsub.f32 %v850_v52, %v888_v63  ;;  %v900_v63 = vmul.f32 %v2380_v7, %v2823_v4  ;;  %v2824_v52 = vld [vmem:[#allocation19_spill] sm:$0xff] }
 0x163   : > { %1226 = vperm.xlu0 %1535, %v914_v42   ;;  %v2812_v42 = vld [vmem:[#allocation7_spill] sm:$0xff] }
 0x164   : > { %1191 = vperm.xlu1 %1536, %v907_v8   ;;  %v881_v16 = vmul.f32 %v2303_v11, %v2812_v42  ;;  %v890_v8 = vmul.f32 %v2316_v10, %v2813_v25  ;;  %v885_v10 = vmul.f32 %v2336_v60, %v2816_v34  ;;  %v893_v42 = vmul.f32 %v2382_v37, %v2824_v52  ;;  %v857_v37 = vld [vmem:[%s2391_s24 + $0xf0] sm:$0xff] }
 0x165   : > { %v902_v25 = vmul.f32 %v2396_v24, %v2331_v23 }
 0x166   : > { %v919_v21 = vsub.f32 %v843_v26, %v881_v16  ;;  %v928_v35 = vsub.f32 %v852_v39, %v890_v8 }
 0x167   : > { %1236 = vperm.xlu0 %1535, %v916_v46   ;;  %v2814_v46 = vld [vmem:[#allocation9_spill] sm:$0xff] }
 0x168   : > { %1201 = vperm.xlu1 %1536, %v909_v31   ;;  %v883_v17 = vmul.f32 %v2320_v62, %v2814_v46  ;;  %v2815_v31 = vld [vmem:[#allocation14_spill] sm:$0xff]  ;;  %v2817_v62 = vld [vmem:[#allocation16_spill] sm:$0xff] }
 0x169   : > { %v892_v11 = vmul.f32 %v2334_v36, %v2815_v31  ;;  %v894_v56 = vmul.f32 %v2349_v41, %v2817_v62  ;;  %v2818_v36 = vld [vmem:[#allocation13_spill] sm:$0xff]  ;;  %v889_v41 = vmul.f32 %v2364_v14, %v2820_v61  ;;  %v853_v14 = vld [vmem:[%s2391_s24 + $0xd0] sm:$0xff] }
 0x16a   : > { %v921_v58 = vsub.f32 %v845_v30, %v883_v17  ;;  %v887_v50 = vmul.f32 %v2351_v43, %v2818_v36 }
 0x16b   : > { %1246 = vperm.xlu0 %1535, %v918_v48   ;;  %v847_v48 = vld [vmem:[%s2391_s24 + $0xa0] sm:$0xff]  ;;  %v930_v45 = vsub.f32 %v854_v12, %v892_v11  ;;  %v932_v60 = vsub.f32 %v856_v19, %v894_v56  ;;  %v927_v27 = vsub.f32 %v851_v57, %v889_v41  ;;  %v2826_v11 = vld [vmem:[#allocation23_spill] sm:$0xff]  ;;  %v899_v12 = vmul.f32 %v2413_v0, %v2342_v55 }
 0x16c   : > { %1211 = vperm.xlu1 %1536, %v911_v15   ;;  %v923_v51 = vsub.f32 %v847_v48, %v885_v10  ;;  %v925_v6 = vsub.f32 %v849_v49, %v887_v50  ;;  %v897_v23 = vmul.f32 %v2406_v33, %v2826_v11  ;;  %v861_v10 = vld [vmem:[%s2391_s24 + $0x110] sm:$0xff]  ;;  %v901_v33 = vmul.f32 %v2422_v53, %v2357_v13  ;;  %v863_v56 = vld [vmem:[%s2391_s24 + $0x120] sm:$0xff] }
 0x16e   : > { %v939_v19 = vsub.f32 %v863_v56, %v901_v33  ;;  %v1620_v33 = vld [vmem:[%s1694_s18 + $0x58] sm:$0xff] }
 0x16f   : > { %1256 = vperm.xlu0 %1535, %v920_v3   ;;  %v2819_v3 = vld [vmem:[#allocation18_spill] sm:$0xff] }
 0x170   : > { %1221 = vperm.xlu1 %1536, %v913_v59   ;;  %v896_v20 = vmul.f32 %v2362_v29, %v2819_v3  ;;  %v858_v59 = vld [vmem:[%s2391_s24 + $0xf8] sm:$0xff] }
 0x172   : > { %v934_v43 = vsub.f32 %v858_v59, %v896_v20 }
 0x173   : > { %1266 = vperm.xlu0 %1535, %v922_v32   ;;  %v898_v32 = vmul.f32 %v2372_v22, %v2821_v5 }
 0x174   : > { %1231 = vperm.xlu1 %1536, %v915_v44   ;;  %v2822_v44 = vld [vmem:[#allocation17_spill] sm:$0xff] }
 0x175   : > { %v891_v29 = vmul.f32 %v2374_v2, %v2822_v44  ;;  %v936_v9 = vsub.f32 %v860_v47, %v898_v32  ;;  %v855_v2 = vld [vmem:[%s2391_s24 + $0xe0] sm:$0xff] }
 0x176   : > { %v931_v7 = vsub.f32 %v855_v2, %v893_v42  ;;  %v1615_v2 = vld [vmem:[%s1694_s18 + $0x28] sm:$0xff] }
 0x177   : > { %1276 = vperm.xlu0 %1535, %v924_v38   ;;  %v929_v22 = vsub.f32 %v853_v14, %v891_v29  ;;  %v1613_v29 = vld [vmem:[%s1694_s18 + $0x8] sm:$0xff] }
 0x178   : > { %1241 = vperm.xlu1 %1536, %v917_v1   ;;  %v862_v1 = vld [vmem:[%s2391_s24 + $0x118] sm:$0xff] }
 0x179   : > { %v938_v26 = vsub.f32 %v862_v1, %v900_v63 }
 0x17b   : > { %1286 = vperm.xlu0 %1535, %v926_v18   ;;  %v864_v18 = vld [vmem:[%s2391_s24 + $0x128] sm:$0xff] }
 0x17c   : > { %1251 = vperm.xlu1 %1536, %v919_v21   ;;  %v2825_v21 = vld [vmem:[#allocation21_spill] sm:$0xff]  ;;  %v940_v17 = vsub.f32 %v864_v18, %v902_v25 }
 0x17d   : > { %v895_v39 = vmul.f32 %v2398_v40, %v2825_v21  ;;  %v1616_v21 = vld [vmem:[%s1694_s18 + $0x38] sm:$0xff] }
 0x17f   : > { %1296 = vperm.xlu0 %1535, %v928_v35   ;;  %v933_v31 = vsub.f32 %v857_v37, %v895_v39  ;;  %v859_v35 = vld [vmem:[%s2391_s24 + $0x100] sm:$0xff] }
 0x180   : > { %1261 = vperm.xlu1 %1536, %v921_v58   ;;  %v935_v40 = vsub.f32 %v859_v35, %v897_v23  ;;  %v1617_v39 = vld [vmem:[%s1694_s18] sm:$0xff]  ;;  %v1618_v23 = vld [vmem:[%s1694_s18 + $0x48] sm:$0xff] }
 0x182   : > { %v2489_v15 = vpop.permute.xlu1 %948 }
 0x183   : > { %1306 = vperm.xlu0 %1535, %v930_v45   ;;  %v2513_v38 = vpop.permute.xlu0 %943  ;;  %v937_v45 = vsub.f32 %v861_v10, %v899_v12  ;;  %v1132_v14 = vmul.f32 %v1613_v29, %v2489_v15 }
 0x184   : > { %1271 = vperm.xlu1 %1536, %v923_v51   ;;  %v1131_v37 = vmul.f32 %v1617_v39, %v2513_v38 }
 0x187   : > { %v2500_v54 = vpop.permute.xlu1 %953  ;;  %1316 = vperm.xlu0 %1535, %v932_v60  }
 0x188   : > { %1281 = vperm.xlu1 %1536, %v925_v6  }
 0x18b   : > { %v2508_v28 = vpop.permute.xlu1 %958  ;;  %1326 = vperm.xlu0 %1535, %v934_v43  }
 0x18c   : > { %1291 = vperm.xlu1 %1536, %v927_v27  }
 0x18f   : > { %v2518_v16 = vpop.permute.xlu1 %963  ;;  %1336 = vperm.xlu0 %1535, %v936_v9  }
 0x190   : > { %1301 = vperm.xlu1 %1536, %v929_v22   ;;  %v1614_v22 = vld [vmem:[%s1694_s18 + $0x18] sm:$0xff] }
 0x191   : > { %v1134_v1 = vmul.f32 %v1614_v22, %v2508_v28 }
 0x192   : > { %v2523_v8 = vpop.permute.xlu0 %988 }
 0x193   : > { %v969_v46 = vpop.permute.xlu1 %968  ;;  %1346 = vperm.xlu0 %1535, %v938_v26   ;;  %v1140_v35 = vmul.f32 %v1618_v23, %v2523_v8  ;;  %v1621_v8 = vld [vmem:[%s1694_s18 + $0x20] sm:$0xff] }
 0x194   : > { %1311 = vperm.xlu1 %1536, %v931_v7   ;;  %v1136_v26 = vmul.f32 %v1615_v2, %v969_v46 }
 0x196   : > { %v2529_v30 = vpop.permute.xlu0 %998 }
 0x197   : > { %v2533_v24 = vpop.permute.xlu1 %973  ;;  %1356 = vperm.xlu0 %1535, %v940_v17   ;;  %v1142_v56 = vmul.f32 %v1620_v33, %v2529_v30  ;;  %v1623_v30 = vld [vmem:[%s1694_s18 + $0x30] sm:$0xff] }
 0x198   : > { %1321 = vperm.xlu1 %1536, %v933_v31  }
 0x19a   : > { %v2536_v58 = vpop.permute.xlu0 %1008 }
 0x19b   : > { %v979_v34 = vpop.permute.xlu1 %978 }
 0x19c   : > { %1331 = vperm.xlu1 %1536, %v935_v40   ;;  %v1138_v28 = vmul.f32 %v1616_v21, %v979_v34  ;;  %v1619_v40 = vld [vmem:[%s1694_s18 + $0x10] sm:$0xff] }
 0x19d   : > { %v1133_v12 = vmul.f32 %v1619_v40, %v2500_v54 }
 0x19e   : > { %v2541_v48 = vpop.permute.xlu0 %1018 }
 0x19f   : > { %v2545_v62 = vpop.permute.xlu1 %983 }
 0x1a0   : > { %1341 = vperm.xlu1 %1536, %v937_v45  }
 0x1a2   : > { %v2548_v51 = vpop.permute.xlu0 %1028 }
 0x1a3   : > { %v2550_v36 = vpop.permute.xlu1 %993 }
 0x1a4   : > { %1351 = vperm.xlu1 %1536, %v939_v19   ;;  %v1135_v19 = vmul.f32 %v1621_v8, %v2518_v16 }
 0x1a6   : > { %v2552_v55 = vpop.permute.xlu0 %1038 }
 0x1a7   : > { %v2554_v0 = vpop.permute.xlu1 %1003 }
 0x1aa   : > { %v2556_v50 = vpop.permute.xlu0 %1048 }
 0x1ab   : > { %v2558_v49 = vpop.permute.xlu1 %1013 }
 0x1ae   : > { %v2560_v60 = vpop.permute.xlu0 %1058 }
 0x1af   : > { %v2562_v13 = vpop.permute.xlu1 %1023 }
 0x1b2   : > { %v2564_v53 = vpop.permute.xlu0 %1068 }
 0x1b3   : > { %v2566_v3 = vpop.permute.xlu1 %1033 }
 0x1b6   : > { %v2568_v20 = vpop.permute.xlu0 %1078 }
 0x1b7   : > { %v2570_v6 = vpop.permute.xlu1 %1043 }
 0x1ba   : > { %v2572_v59 = vpop.permute.xlu0 %1088 }
 0x1bb   : > { %v2574_v61 = vpop.permute.xlu1 %1053 }
 0x1be   : > { %v2576_v41 = vpop.permute.xlu0 %1098 }
 0x1bf   : > { %v2578_v57 = vpop.permute.xlu1 %1063 }
 0x1c2   : > { %v2580_v43 = vpop.permute.xlu0 %1108 }
 0x1c3   : > { %v2582_v5 = vpop.permute.xlu1 %1073 }
 0x1c6   : > { %v2584_v32 = vpop.permute.xlu0 %1118 }
 0x1c7   : > { %v2586_v27 = vpop.permute.xlu1 %1083 }
 0x1ca   : > { %v2588_v47 = vpop.permute.xlu0 %1128 }
 0x1cb   : > { %v2590_v44 = vpop.permute.xlu1 %1093 }
 0x1ce   : > { %v1177_v9 = vpop.permute.xlu0 %1176 }
 0x1cf   : > { %v2600_v4 = vpop.permute.xlu1 %1103  ;;  %v1360_v63 = vadd.f32 %v1177_v9, %v1132_v14 }
 0x1d1   : > { %1398 = vst.msk [vmem:[%s2598_s27 + $0x8] sm:$0xff] %vm256_vm0, %v1360_v63  ;;  %v1622_v63 = vld [vmem:[%s1694_s18 + $0x68] sm:$0xff] }
 0x1d2   : > { %v1187_v15 = vpop.permute.xlu0 %1186  ;;  %v1144_v22 = vmul.f32 %v1622_v63, %v2536_v58  ;;  %v1625_v58 = vld [vmem:[%s1694_s18 + $0x40] sm:$0xff] }
 0x1d3   : > { %v2606_v52 = vpop.permute.xlu1 %1113  ;;  %v1362_v42 = vadd.f32 %v1187_v15, %v1134_v1  ;;  %v1137_v1 = vmul.f32 %v1623_v30, %v2533_v24 }
 0x1d5   : > { %1400 = vst.msk [vmem:[%s2598_s27 + $0x18] sm:$0xff] %vm256_vm0, %v1362_v42 }
 0x1d6   : > { %v1197_v25 = vpop.permute.xlu0 %1196 }
 0x1d7   : > { %v2611_v7 = vpop.permute.xlu1 %1123  ;;  %v1364_v18 = vadd.f32 %v1197_v25, %v1136_v26  ;;  %v1624_v26 = vld [vmem:[%s1694_s18 + $0x78] sm:$0xff] }
 0x1d8   : > { %v1146_v25 = vmul.f32 %v1624_v26, %v2541_v48  ;;  %v1627_v48 = vld [vmem:[%s1694_s18 + $0x50] sm:$0xff] }
 0x1d9   : > { %1402 = vst.msk [vmem:[%s2598_s27 + $0x28] sm:$0xff] %vm256_vm0, %v1364_v18  ;;  %v1139_v18 = vmul.f32 %v1625_v58, %v2545_v62 }
 0x1da   : > { %v1207_v17 = vpop.permute.xlu0 %1206 }
 0x1db   : > { %v1172_v46 = vpop.permute.xlu1 %1171  ;;  %v1366_v31 = vadd.f32 %v1207_v17, %v1138_v28 }
 0x1dc   : > { %v1359_v11 = vadd.f32 %v1172_v46, %v1131_v37  ;;  %v1626_v37 = vld [vmem:[%s1694_s18 + $0x88] sm:$0xff]  ;;  %v1141_v46 = vmul.f32 %v1627_v48, %v2550_v36 }
 0x1dd   : > { %1404 = vst.msk [vmem:[%s2598_s27 + $0x38] sm:$0xff] %vm256_vm0, %v1366_v31  ;;  %v1148_v17 = vmul.f32 %v1626_v37, %v2548_v51  ;;  %v1629_v51 = vld [vmem:[%s1694_s18 + $0x60] sm:$0xff] }
 0x1de   : > { %1397 = vst.msk [vmem:[%s2598_s27] sm:$0xff] %vm256_vm0, %v1359_v11  ;;  %v1217_v34 = vpop.permute.xlu0 %1216 }
 0x1df   : > { %v1182_v38 = vpop.permute.xlu1 %1181  ;;  %v1368_v10 = vadd.f32 %v1217_v34, %v1140_v35  ;;  %v1628_v35 = vld [vmem:[%s1694_s18 + $0x98] sm:$0xff] }
 0x1e0   : > { %v1361_v45 = vadd.f32 %v1182_v38, %v1133_v12  ;;  %v1150_v40 = vmul.f32 %v1628_v35, %v2552_v55  ;;  %v1143_v12 = vmul.f32 %v1629_v51, %v2554_v0  ;;  %v1631_v55 = vld [vmem:[%s1694_s18 + $0x70] sm:$0xff] }
 0x1e1   : > { %1406 = vst.msk [vmem:[%s2598_s27 + $0x48] sm:$0xff] %vm256_vm0, %v1368_v10 }
 0x1e2   : > { %1399 = vst.msk [vmem:[%s2598_s27 + $0x10] sm:$0xff] %vm256_vm0, %v1361_v45  ;;  %v1227_v54 = vpop.permute.xlu0 %1226  ;;  %v1630_v45 = vld [vmem:[%s1694_s18 + $0xa8] sm:$0xff] }
 0x1e3   : > { %v1192_v29 = vpop.permute.xlu1 %1191  ;;  %v1370_v14 = vadd.f32 %v1227_v54, %v1142_v56  ;;  %v1152_v33 = vmul.f32 %v1630_v45, %v2556_v50  ;;  %v1145_v56 = vmul.f32 %v1631_v55, %v2558_v49  ;;  %v1633_v50 = vld [vmem:[%s1694_s18 + $0x80] sm:$0xff] }
 0x1e4   : > { %v1363_v9 = vadd.f32 %v1192_v29, %v1135_v19  ;;  %v1632_v29 = vld [vmem:[%s1694_s18 + $0xb8] sm:$0xff] }
 0x1e5   : > { %1408 = vst.msk [vmem:[%s2598_s27 + $0x58] sm:$0xff] %vm256_vm0, %v1370_v14  ;;  %v1154_v14 = vmul.f32 %v1632_v29, %v2560_v60  ;;  %v1635_v60 = vld [vmem:[%s1694_s18 + $0x90] sm:$0xff] }
 0x1e6   : > { %1401 = vst.msk [vmem:[%s2598_s27 + $0x20] sm:$0xff] %vm256_vm0, %v1363_v9  ;;  %v1237_v16 = vpop.permute.xlu0 %1236  ;;  %v1147_v9 = vmul.f32 %v1633_v50, %v2562_v13 }
 0x1e7   : > { %v1202_v15 = vpop.permute.xlu1 %1201  ;;  %v1372_v42 = vadd.f32 %v1237_v16, %v1144_v22 }
 0x1e8   : > { %v1365_v2 = vadd.f32 %v1202_v15, %v1137_v1  ;;  %v1634_v1 = vld [vmem:[%s1694_s18 + $0xc8] sm:$0xff]  ;;  %v1149_v15 = vmul.f32 %v1635_v60, %v2566_v3 }
 0x1e9   : > { %1410 = vst.msk [vmem:[%s2598_s27 + $0x68] sm:$0xff] %vm256_vm0, %v1372_v42  ;;  %v1156_v16 = vmul.f32 %v1634_v1, %v2564_v53  ;;  %v1637_v53 = vld [vmem:[%s1694_s18 + $0xa0] sm:$0xff]  ;;  %v1649_v1 = vld [vmem:[%s1694_s18 + $0x110] sm:$0xff] }
 0x1ea   : > { %1403 = vst.msk [vmem:[%s2598_s27 + $0x30] sm:$0xff] %vm256_vm0, %v1365_v2  ;;  %v1247_v24 = vpop.permute.xlu0 %1246 }
 0x1eb   : > { %v1212_v21 = vpop.permute.xlu1 %1211  ;;  %v1374_v28 = vadd.f32 %v1247_v24, %v1146_v25  ;;  %v1636_v25 = vld [vmem:[%s1694_s18 + $0xd8] sm:$0xff] }
 0x1ec   : > { %v1367_v39 = vadd.f32 %v1212_v21, %v1139_v18  ;;  %v1158_v58 = vmul.f32 %v1636_v25, %v2568_v20  ;;  %v1151_v18 = vmul.f32 %v1637_v53, %v2570_v6  ;;  %v1639_v20 = vld [vmem:[%s1694_s18 + $0xb0] sm:$0xff] }
 0x1ed   : > { %1412 = vst.msk [vmem:[%s2598_s27 + $0x78] sm:$0xff] %vm256_vm0, %v1374_v28 }
 0x1ee   : > { %1405 = vst.msk [vmem:[%s2598_s27 + $0x40] sm:$0xff] %vm256_vm0, %v1367_v39  ;;  %v1257_v62 = vpop.permute.xlu0 %1256  ;;  %v1638_v39 = vld [vmem:[%s1694_s18 + $0xe8] sm:$0xff] }
 0x1ef   : > { %v1222_v31 = vpop.permute.xlu1 %1221  ;;  %v1376_v11 = vadd.f32 %v1257_v62, %v1148_v17  ;;  %v1160_v37 = vmul.f32 %v1638_v39, %v2572_v59  ;;  %v1153_v17 = vmul.f32 %v1639_v20, %v2574_v61  ;;  %v1641_v59 = vld [vmem:[%s1694_s18 + $0xc0] sm:$0xff] }
 0x1f0   : > { %v1369_v23 = vadd.f32 %v1222_v31, %v1141_v46  ;;  %v1640_v31 = vld [vmem:[%s1694_s18 + $0xf8] sm:$0xff] }
 0x1f1   : > { %1414 = vst.msk [vmem:[%s2598_s27 + $0x88] sm:$0xff] %vm256_vm0, %v1376_v11  ;;  %v1162_v11 = vmul.f32 %v1640_v31, %v2576_v41  ;;  %v1643_v41 = vld [vmem:[%s1694_s18 + $0xd0] sm:$0xff] }
 0x1f2   : > { %1407 = vst.msk [vmem:[%s2598_s27 + $0x50] sm:$0xff] %vm256_vm0, %v1369_v23  ;;  %v1267_v36 = vpop.permute.xlu0 %1266  ;;  %v1155_v23 = vmul.f32 %v1641_v59, %v2578_v57 }
 0x1f3   : > { %v1232_v34 = vpop.permute.xlu1 %1231  ;;  %v1378_v38 = vadd.f32 %v1267_v36, %v1150_v40 }
 0x1f4   : > { %v1371_v10 = vadd.f32 %v1232_v34, %v1143_v12  ;;  %v1642_v12 = vld [vmem:[%s1694_s18 + $0x108] sm:$0xff]  ;;  %v1157_v34 = vmul.f32 %v1643_v41, %v2582_v5 }
 0x1f5   : > { %1416 = vst.msk [vmem:[%s2598_s27 + $0x98] sm:$0xff] %vm256_vm0, %v1378_v38  ;;  %v1164_v36 = vmul.f32 %v1642_v12, %v2580_v43  ;;  %v1645_v43 = vld [vmem:[%s1694_s18 + $0xe0] sm:$0xff] }
 0x1f6   : > { %1409 = vst.msk [vmem:[%s2598_s27 + $0x60] sm:$0xff] %vm256_vm0, %v1371_v10  ;;  %v1277_v0 = vpop.permute.xlu0 %1276 }
 0x1f7   : > { %v1242_v8 = vpop.permute.xlu1 %1241  ;;  %v1380_v19 = vadd.f32 %v1277_v0, %v1152_v33  ;;  %v1644_v33 = vld [vmem:[%s1694_s18 + $0x118] sm:$0xff] }
 0x1f8   : > { %v1373_v54 = vadd.f32 %v1242_v8, %v1145_v56  ;;  %v1166_v55 = vmul.f32 %v1644_v33, %v2584_v32  ;;  %v1159_v56 = vmul.f32 %v1645_v43, %v2586_v27  ;;  %v1647_v32 = vld [vmem:[%s1694_s18 + $0xf0] sm:$0xff] }
 0x1f9   : > { %1418 = vst.msk [vmem:[%s2598_s27 + $0xa8] sm:$0xff] %vm256_vm0, %v1380_v19 }
 0x1fa   : > { %1411 = vst.msk [vmem:[%s2598_s27 + $0x70] sm:$0xff] %vm256_vm0, %v1373_v54  ;;  %v1287_v49 = vpop.permute.xlu0 %1286  ;;  %v1646_v54 = vld [vmem:[%s1694_s18 + $0x128] sm:$0xff] }
 0x1fb   : > { %v1252_v63 = vpop.permute.xlu1 %1251  ;;  %v1382_v22 = vadd.f32 %v1287_v49, %v1154_v14  ;;  %v1168_v29 = vmul.f32 %v1646_v54, %v2588_v47  ;;  %v1161_v14 = vmul.f32 %v1647_v32, %v2590_v44  ;;  %v1165_v44 = vmul.f32 %v1649_v1, %v2606_v52 }
 0x1fc   : > { %v1375_v30 = vadd.f32 %v1252_v63, %v1147_v9  ;;  %v1648_v63 = vld [vmem:[%s1694_s18 + $0x100] sm:$0xff] }
 0x1fd   : > { %1420 = vst.msk [vmem:[%s2598_s27 + $0xb8] sm:$0xff] %vm256_vm0, %v1382_v22  ;;  %v1163_v47 = vmul.f32 %v1648_v63, %v2600_v4 }
 0x1fe   : > { %1413 = vst.msk [vmem:[%s2598_s27 + $0x80] sm:$0xff] %vm256_vm0, %v1375_v30  ;;  %v1297_v13 = vpop.permute.xlu0 %1296 }
 0x1ff   : > { %v1262_v42 = vpop.permute.xlu1 %1261  ;;  %v1384_v2 = vadd.f32 %v1297_v13, %v1156_v16 }
 0x200   : > { %v1377_v26 = vadd.f32 %v1262_v42, %v1149_v15  ;;  %v1650_v15 = vld [vmem:[%s1694_s18 + $0x120] sm:$0xff] }
 0x201   : > { %1422 = vst.msk [vmem:[%s2598_s27 + $0xc8] sm:$0xff] %vm256_vm0, %v1384_v2  ;;  %v1167_v13 = vmul.f32 %v1650_v15, %v2611_v7 }
 0x202   : > { %1415 = vst.msk [vmem:[%s2598_s27 + $0x90] sm:$0xff] %vm256_vm0, %v1377_v26  ;;  %v1307_v3 = vpop.permute.xlu0 %1306 }
 0x203   : > { %v1272_v24 = vpop.permute.xlu1 %1271  ;;  %v1386_v21 = vadd.f32 %v1307_v3, %v1158_v58 }
 0x204   : > { %v1379_v28 = vadd.f32 %v1272_v24, %v1151_v18 }
 0x205   : > { %1424 = vst.msk [vmem:[%s2598_s27 + $0xd8] sm:$0xff] %vm256_vm0, %v1386_v21 }
 0x206   : > { %1417 = vst.msk [vmem:[%s2598_s27 + $0xa0] sm:$0xff] %vm256_vm0, %v1379_v28  ;;  %v1317_v6 = vpop.permute.xlu0 %1316 }
 0x207   : > { %v1282_v48 = vpop.permute.xlu1 %1281  ;;  %v1388_v46 = vadd.f32 %v1317_v6, %v1160_v37 }
 0x208   : > { %v1381_v62 = vadd.f32 %v1282_v48, %v1153_v17 }
 0x209   : > { %1426 = vst.msk [vmem:[%s2598_s27 + $0xe8] sm:$0xff] %vm256_vm0, %v1388_v46 }
 0x20a   : > { %1419 = vst.msk [vmem:[%s2598_s27 + $0xb0] sm:$0xff] %vm256_vm0, %v1381_v62  ;;  %v1327_v61 = vpop.permute.xlu0 %1326 }
 0x20b   : > { %v1292_v35 = vpop.permute.xlu1 %1291  ;;  %v1390_v40 = vadd.f32 %v1327_v61, %v1162_v11 }
 0x20c   : > { %v1383_v51 = vadd.f32 %v1292_v35, %v1155_v23 }
 0x20d   : > { %1428 = vst.msk [vmem:[%s2598_s27 + $0xf8] sm:$0xff] %vm256_vm0, %v1390_v40 }
 0x20e   : > { %1421 = vst.msk [vmem:[%s2598_s27 + $0xc0] sm:$0xff] %vm256_vm0, %v1383_v51  ;;  %v1337_v57 = vpop.permute.xlu0 %1336 }
 0x20f   : > { %v1302_v38 = vpop.permute.xlu1 %1301  ;;  %v1392_v10 = vadd.f32 %v1337_v57, %v1164_v36 }
 0x210   : > { %v1385_v45 = vadd.f32 %v1302_v38, %v1157_v34 }
 0x211   : > { %1430 = vst.msk [vmem:[%s2598_s27 + $0x108] sm:$0xff] %vm256_vm0, %v1392_v10 }
 0x212   : > { %1423 = vst.msk [vmem:[%s2598_s27 + $0xd0] sm:$0xff] %vm256_vm0, %v1385_v45  ;;  %v1347_v5 = vpop.permute.xlu0 %1346 }
 0x213   : > { %v1312_v0 = vpop.permute.xlu1 %1311  ;;  %v1394_v8 = vadd.f32 %v1347_v5, %v1166_v55 }
 0x214   : > { %v1387_v19 = vadd.f32 %v1312_v0, %v1159_v56 }
 0x215   : > { %1432 = vst.msk [vmem:[%s2598_s27 + $0x118] sm:$0xff] %vm256_vm0, %v1394_v8 }
 0x216   : > { %1425 = vst.msk [vmem:[%s2598_s27 + $0xe0] sm:$0xff] %vm256_vm0, %v1387_v19  ;;  %v1357_v27 = vpop.permute.xlu0 %1356 }
 0x217   : > { %v1322_v50 = vpop.permute.xlu1 %1321  ;;  %v1396_v9 = vadd.f32 %v1357_v27, %v1168_v29 }
 0x218   : > { %v1389_v49 = vadd.f32 %v1322_v50, %v1161_v14 }
 0x219   : > { %1434 = vst.msk [vmem:[%s2598_s27 + $0x128] sm:$0xff] %vm256_vm0, %v1396_v9 }
 0x21a   : > { %1427 = vst.msk [vmem:[%s2598_s27 + $0xf0] sm:$0xff] %vm256_vm0, %v1389_v49 }
 0x21b   : > { %v1332_v22 = vpop.permute.xlu1 %1331 }
 0x21c   : > { %v1391_v30 = vadd.f32 %v1332_v22, %v1163_v47 }
 0x21e   : > { %1429 = vst.msk [vmem:[%s2598_s27 + $0x100] sm:$0xff] %vm256_vm0, %v1391_v30 }
 0x21f   : > { %v1342_v16 = vpop.permute.xlu1 %1341 }
 0x220   : > { %v1393_v60 = vadd.f32 %v1342_v16, %v1165_v44 }
 0x222   : > { %1431 = vst.msk [vmem:[%s2598_s27 + $0x110] sm:$0xff] %vm256_vm0, %v1393_v60 }
 0x223   : > { %v1352_v42 = vpop.permute.xlu1 %1351 }
 0x224   : > { %v1395_v2 = vadd.f32 %v1352_v42, %v1167_v13 }
 0x226   : > { %1433 = vst.msk [vmem:[%s2598_s27 + $0x120] sm:$0xff] %vm256_vm0, %v1395_v2 }
 0x227 PF: > { %s13_s12 = sadd.s32 1, %s1657_s12  }
 0x228   : > { %p10_p4 = scmp.ge.s32.totalorder %s13_s12, 8  }
 0x22a   :  { %12 = sbr.rel (!%p10_p4) target bundleno = 1 (0x1), region = 68 }

</bundles_post_ra>
